<compile_context>
chip_gen: v5e
topology: v5e:2x2
jax: 0.10.0
libtpu: 0.0.40
codegen_flags: <defaults>
</compile_context>

<pallas_src>
import math

import jax
import jax.numpy as jnp
from jax import lax
from jax.experimental import pallas as pl
from jax.experimental.pallas import tpu as pltpu

LANE = 128          # lanes per vreg
SUB = 8             # sublane rows per inner sub-tile -> one full (8,128) f32 vreg
R_BLK_MAX = 64      # sublane rows per grid step (64*128 = 8192 samples)
_N_BISECT = 7       # bracket 1.5 -> ~6e-3 before Newton polish
_N_NEWTON = 2
_LOG_2PI2 = math.log(2.0) + 2.0 * math.log(math.pi)
_TWO_PI = 2.0 * math.pi


def _refine_recip(r, x):
    """One Newton refinement of r ~= 1/x."""
    return r * (2.0 - x * r)


def _make_kernel(n_comp, with_coeff):
    """Build the kernel for a static number of mixture components."""

    def kernel(*refs):
        if with_coeff:
            q_ref, lam_ref, x_ref, logc_ref, out_ref = refs
        else:
            q_ref, lam_ref, x_ref, out_ref = refs
            logc_ref = None

        n_sub = q_ref.shape[2] // SUB   # static sub-tile count per grid step

        @pl.loop(0, n_sub)
        def _(r):
            row0 = pl.multiple_of(r * SUB, SUB)
            q = q_ref[:, :, pl.ds(row0, SUB), :]       # (K, 4, 8, 128)
            lam = lam_ref[:, :, pl.ds(row0, SUB), :]   # (K, 3, 8, 128)
            x = x_ref[:, pl.ds(row0, SUB), :]          # (4, 8, 128)

            # Normalize mode and target quaternions.
            q = q * lax.rsqrt(jnp.sum(q * q, axis=1, keepdims=True) + 1e-12)
            x = x * lax.rsqrt(jnp.sum(x * x, axis=0, keepdims=True) + 1e-12)

            q0, q1, q2, q3 = q[:, 0], q[:, 1], q[:, 2], q[:, 3]   # (K, 8, 128)
            x0, x1, x2, x3 = x[0], x[1], x[2], x[3]               # (8, 128)

            # Projections of the target onto the 3 orthonormal directions
            # orthogonal to the mode quaternion q.
            d1 = -q1 * x0 + q0 * x1 - q3 * x2 + q2 * x3
            d2 = -q2 * x0 + q3 * x1 + q0 * x2 - q1 * x3
            d3 = -q3 * x0 - q2 * x1 + q1 * x2 + q0 * x3

            l1, l2, l3 = lam[:, 0], lam[:, 1], lam[:, 2]          # (K, 8, 128)
            quad = l1 * d1 * d1 + l2 * d2 * d2 + l3 * d3 * d3

            # ---- Bingham log-normalizer: Kume-Wood saddle point ----------
            # Eigenvalue set {0, l1, l2, l3}, shifted so all theta_i >= 1.
            shift = jnp.maximum(jnp.maximum(l1, l2),
                                jnp.maximum(l3, 0.0)) + 1.0
            th0 = shift
            th1 = shift - l1
            th2 = shift - l2
            th3 = shift - l3
            th_min = jnp.minimum(jnp.minimum(th0, th1), jnp.minimum(th2, th3))
            th_max = jnp.maximum(jnp.maximum(th0, th1), jnp.maximum(th2, th3))

            # Root of K'(t) = 0.5 * sum_i 1/(theta_i - t) = 1 lies in
            #   [th_min - 2, min(th_max - 2, th_min - 0.5)]  (width <= 1.5).
            lo = th_min - 2.0
            hi = jnp.minimum(th_max - 2.0, th_min - 0.5)

            # Bisection with (mid, half-step) carry and a division-free sign
            # test:  K'(mid) < 1  <=>  0.5*(cd*(a+b) + ab*(c+d)) < ab*cd
            # (all factors theta_i - mid > 0 over the whole bracket).
            mid = 0.5 * (lo + hi)
            step = 0.25 * (hi - lo)
            for _ in range(_N_BISECT):              # unrolled at trace time
                a = th0 - mid
                b = th1 - mid
                c = th2 - mid
                d = th3 - mid
                ab = a * b
                cd = c * d
                lhs = cd * (a + b) + ab * (c + d)
                neg = 0.5 * lhs < ab * cd           # root above mid
                mid = mid + jnp.where(neg, step, -step)
                step = step * 0.5
            t_hat = mid

            # Newton polish on f(t) = K'(t) - 1; reciprocals on the EUP slot.
            for it in range(_N_NEWTON):
                s0 = th0 - t_hat
                s1 = th1 - t_hat
                s2 = th2 - t_hat
                s3 = th3 - t_hat
                r0 = pl.reciprocal(s0, approx=True)
                r1 = pl.reciprocal(s1, approx=True)
                r2 = pl.reciprocal(s2, approx=True)
                r3 = pl.reciprocal(s3, approx=True)
                if it == _N_NEWTON - 1:             # full accuracy on last step
                    r0 = _refine_recip(r0, s0)
                    r1 = _refine_recip(r1, s1)
                    r2 = _refine_recip(r2, s2)
                    r3 = _refine_recip(r3, s3)
                kp = 0.5 * ((r0 + r1) + (r2 + r3))
                kpp = 0.5 * ((r0 * r0 + r1 * r1) + (r2 * r2 + r3 * r3))
                inv_kpp = pl.reciprocal(kpp, approx=True)
                t_hat = t_hat - (kp - 1.0) * inv_kpp

            # ---- Epilogue: saddle-point log-normalizer --------------------
            s0 = th0 - t_hat
            s1 = th1 - t_hat
            s2 = th2 - t_hat
            s3 = th3 - t_hat
            r0 = _refine_recip(pl.reciprocal(s0, approx=True), s0)
            r1 = _refine_recip(pl.reciprocal(s1, approx=True), s1)
            r2 = _refine_recip(pl.reciprocal(s2, approx=True), s2)
            r3 = _refine_recip(pl.reciprocal(s3, approx=True), s3)
            r0_2, r1_2, r2_2, r3_2 = r0 * r0, r1 * r1, r2 * r2, r3 * r3
            k2 = 0.5 * ((r0_2 + r1_2) + (r2_2 + r3_2))
            k3 = (r0_2 * r0 + r1_2 * r1) + (r2_2 * r2 + r3_2 * r3)
            k4 = 3.0 * ((r0_2 * r0_2 + r1_2 * r1_2) + (r2_2 * r2_2 + r3_2 * r3_2))
            inv_k2 = _refine_recip(pl.reciprocal(k2, approx=True), k2)
            inv_k2_2 = inv_k2 * inv_k2
            t_corr = (0.125 * k4 * inv_k2_2
                      - (5.0 / 24.0) * (k3 * k3) * (inv_k2_2 * inv_k2))

            # 0.5*sum_i log(r_i) - 0.5*log(2*pi*K2)
            #   == -0.5*log(prod_i s_i * 2*pi*K2)   (one log total)
            prod_s = (s0 * s1) * (s2 * s3)
            log_c = (_LOG_2PI2 - 0.5 * jnp.log(prod_s * (_TWO_PI * k2))
                     - t_hat + t_corr)
            log_norm = shift + log_c                         # (K, 8, 128)

            log_pdf = quad - log_norm                        # (K, 8, 128)
            if with_coeff:
                log_pdf = log_pdf + logc_ref[:, pl.ds(row0, SUB), :]

            if n_comp == 1:
                lse = log_pdf[0]                             # K==1 fast path
            else:
                m = jnp.max(log_pdf, axis=0)                 # (8, 128)
                lse = m + jnp.log(jnp.sum(jnp.exp(log_pdf - m), axis=0))

            out_ref[pl.ds(row0, SUB), :] = lse               # lane-dense store

    return kernel


def mixture_bingham_loss(predicted_rotation, predicted_lambda,
                         predicted_coeff, target):
    """predicted_rotation (B, K*4), predicted_lambda (B, K*3),
    predicted_coeff (B, K), target (B, 4)  ->  (1,) f32 mixture NLL."""
    B, K = predicted_coeff.shape
    q = predicted_rotation.reshape(B, K, 4).astype(jnp.float32)
    lam = predicted_lambda.reshape(B, K, 3).astype(jnp.float32)
    x = target.reshape(B, 4).astype(jnp.float32)
    with_coeff = K > 1

    # ---- batch tiling ------------------------------------------------------
    rows_min = -(-B // LANE)                      # ceil(B / 128)
    rows_min = -(-rows_min // SUB) * SUB          # round up to multiple of 8
    if rows_min <= 2 * SUB:
        r_blk = SUB                               # tiny batch: single vreg rows
    else:
        # keep >= 2 grid steps so both v7x TensorCores get work
        r_blk = max(SUB, min(R_BLK_MAX, (rows_min // 2) // SUB * SUB))
    rows_total = -(-rows_min // r_blk) * r_blk
    n_tiles = rows_total // r_blk
    Bp = rows_total * LANE
    pad = Bp - B

    # Layout: component-major; batch occupies the last (sublane, lane) dims so
    # every vreg the kernel touches is a full (8, 128) tile.  Zero padding is
    # harmless (padded lanes are sliced off before the mean).
    q_t = jnp.transpose(jnp.pad(q, ((0, pad), (0, 0), (0, 0))),
                        (1, 2, 0)).reshape(K, 4, rows_total, LANE)
    lam_t = jnp.transpose(jnp.pad(lam, ((0, pad), (0, 0), (0, 0))),
                          (1, 2, 0)).reshape(K, 3, rows_total, LANE)
    x_t = jnp.transpose(jnp.pad(x, ((0, pad), (0, 0))),
                        (1, 0)).reshape(4, rows_total, LANE)

    in_specs = [
        pl.BlockSpec((K, 4, r_blk, LANE), lambda i: (0, 0, i, 0)),
        pl.BlockSpec((K, 3, r_blk, LANE), lambda i: (0, 0, i, 0)),
        pl.BlockSpec((4, r_blk, LANE), lambda i: (0, i, 0)),
    ]
    inputs = [q_t, lam_t, x_t]
    if with_coeff:
        log_coeff = jnp.log(predicted_coeff.astype(jnp.float32))
        lc_t = jnp.transpose(jnp.pad(log_coeff, ((0, pad), (0, 0))),
                             (1, 0)).reshape(K, rows_total, LANE)
        in_specs.append(pl.BlockSpec((K, r_blk, LANE), lambda i: (0, i, 0)))
        inputs.append(lc_t)

    lse = pl.pallas_call(
        _make_kernel(K, with_coeff),
        out_shape=jax.ShapeDtypeStruct((rows_total, LANE), jnp.float32),
        grid_spec=pltpu.PrefetchScalarGridSpec(
            num_scalar_prefetch=0,
            grid=(n_tiles,),
            in_specs=in_specs,
            out_specs=pl.BlockSpec((r_blk, LANE), lambda i: (i, 0)),
        ),
        compiler_params=pltpu.CompilerParams(
            dimension_semantics=("parallel",)),
    )(*inputs)

    # Drop padded samples; batch mean + negation are trivial XLA ops.
    loss = -jnp.mean(lse.reshape(-1)[:B])
    return loss.reshape(1)


if __name__ == "__main__":
    key = jax.random.PRNGKey(0)
    k1, k2, k3, k4 = jax.random.split(key, 4)
    B, K = 2, 4
    predicted_rotation = jax.random.normal(k1, (B, K * 4), dtype=jnp.float32)
    predicted_lambda = -10.0 * jax.nn.softplus(
        jax.random.normal(k2, (B, K * 3), dtype=jnp.float32))
    predicted_coeff = jax.nn.softmax(
        jax.random.normal(k3, (B, K), dtype=jnp.float32), axis=1)
    target = jax.random.normal(k4, (B, 4), dtype=jnp.float32)
    target = target / jnp.linalg.norm(target, axis=1, keepdims=True)

    loss = mixture_bingham_loss(predicted_rotation, predicted_lambda,
                                predicted_coeff, target)
    loss = jax.block_until_ready(loss)
    assert loss.shape == (1,) and loss.dtype == jnp.float32
    assert bool(jnp.isfinite(loss).all())
    print("KERNEL_OK")
</pallas_src>

<mosaic_0001>
module attributes {stable_mosaic.version = 11 : i64} {
  func.func @kernel(%arg0: i32, %arg1: memref<4x4x8x128xf32, #tpu.memory_space<vmem>>, %arg2: memref<4x3x8x128xf32, #tpu.memory_space<vmem>>, %arg3: memref<4x8x128xf32, #tpu.memory_space<vmem>>, %arg4: memref<4x8x128xf32, #tpu.memory_space<vmem>>, %arg5: memref<8x128xf32, #tpu.memory_space<vmem>>) attributes {dimension_semantics = [#tpu.dimension_semantics<parallel>], iteration_bounds = array<i64: 1>, scalar_prefetch = 0 : i64, scratch_operands = 0 : i64, tpu.core_type = #tpu.core_type<tc>, window_params = [{transform_indices = @transform_0, window_bounds = array<i64: 4, 4, 8, 128>}, {transform_indices = @transform_1, window_bounds = array<i64: 4, 3, 8, 128>}, {transform_indices = @transform_2, window_bounds = array<i64: 4, 8, 128>}, {transform_indices = @transform_3, window_bounds = array<i64: 4, 8, 128>}, {transform_indices = @transform_4, window_bounds = array<i64: 8, 128>}]} {
    %c0_i32 = arith.constant 0 : i32
    %c1_i32 = arith.constant 1 : i32
    %0 = arith.muli %c0_i32, %c1_i32 : i32
    %c0_i32_0 = arith.constant 0 : i32
    %1 = arith.addi %c0_i32_0, %0 : i32
    %c8_i32 = arith.constant 8 : i32
    %2 = arith.muli %1, %c8_i32 : i32
    %3 = tpu.assume_multiple %2, 8 : i32
    %c0 = arith.constant 0 : index
    %c0_1 = arith.constant 0 : index
    %4 = arith.index_cast %3 : i32 to index
    %c0_2 = arith.constant 0 : index
    %5 = vector.load %arg1[%c0, %c0_1, %4, %c0_2] : memref<4x4x8x128xf32, #tpu.memory_space<vmem>>, vector<4x4x8x128xf32>
    %c0_3 = arith.constant 0 : index
    %c0_4 = arith.constant 0 : index
    %6 = arith.index_cast %3 : i32 to index
    %c0_5 = arith.constant 0 : index
    %7 = vector.load %arg2[%c0_3, %c0_4, %6, %c0_5] : memref<4x3x8x128xf32, #tpu.memory_space<vmem>>, vector<4x3x8x128xf32>
    %c0_6 = arith.constant 0 : index
    %8 = arith.index_cast %3 : i32 to index
    %c0_7 = arith.constant 0 : index
    %9 = vector.load %arg3[%c0_6, %8, %c0_7] : memref<4x8x128xf32, #tpu.memory_space<vmem>>, vector<4x8x128xf32>
    %10 = arith.mulf %5, %5 : vector<4x4x8x128xf32>
    %cst = arith.constant dense<0.000000e+00> : vector<4x8x128xf32>
    %11 = vector.multi_reduction <add>, %10, %cst [1] : vector<4x4x8x128xf32> to vector<4x8x128xf32>
    %12 = vector.shape_cast %11 : vector<4x8x128xf32> to vector<4x1x8x128xf32>
    %cst_8 = arith.constant 9.99999996E-13 : f32
    %13 = vector.broadcast %cst_8 : f32 to vector<4x1x8x128xf32>
    %14 = arith.addf %12, %13 : vector<4x1x8x128xf32>
    %15 = math.rsqrt %14 : vector<4x1x8x128xf32>
    %16 = vector.broadcast %15 : vector<4x1x8x128xf32> to vector<4x4x8x128xf32>
    %17 = arith.mulf %5, %16 : vector<4x4x8x128xf32>
    %18 = arith.mulf %9, %9 : vector<4x8x128xf32>
    %cst_9 = arith.constant dense<0.000000e+00> : vector<8x128xf32>
    %19 = vector.multi_reduction <add>, %18, %cst_9 [0] : vector<4x8x128xf32> to vector<8x128xf32>
    %20 = vector.shape_cast %19 : vector<8x128xf32> to vector<1x8x128xf32>
    %cst_10 = arith.constant 9.99999996E-13 : f32
    %21 = vector.broadcast %cst_10 : f32 to vector<1x8x128xf32>
    %22 = arith.addf %20, %21 : vector<1x8x128xf32>
    %23 = math.rsqrt %22 : vector<1x8x128xf32>
    %24 = vector.broadcast %23 : vector<1x8x128xf32> to vector<4x8x128xf32>
    %25 = arith.mulf %9, %24 : vector<4x8x128xf32>
    %26 = vector.extract_strided_slice %17 {offsets = [0, 0, 0, 0], sizes = [4, 1, 8, 128], strides = [1, 1, 1, 1]} : vector<4x4x8x128xf32> to vector<4x1x8x128xf32>
    %27 = vector.shape_cast %26 : vector<4x1x8x128xf32> to vector<4x8x128xf32>
    %28 = vector.extract_strided_slice %17 {offsets = [0, 1, 0, 0], sizes = [4, 1, 8, 128], strides = [1, 1, 1, 1]} : vector<4x4x8x128xf32> to vector<4x1x8x128xf32>
    %29 = vector.shape_cast %28 : vector<4x1x8x128xf32> to vector<4x8x128xf32>
    %30 = vector.extract_strided_slice %17 {offsets = [0, 2, 0, 0], sizes = [4, 1, 8, 128], strides = [1, 1, 1, 1]} : vector<4x4x8x128xf32> to vector<4x1x8x128xf32>
    %31 = vector.shape_cast %30 : vector<4x1x8x128xf32> to vector<4x8x128xf32>
    %32 = vector.extract_strided_slice %17 {offsets = [0, 3, 0, 0], sizes = [4, 1, 8, 128], strides = [1, 1, 1, 1]} : vector<4x4x8x128xf32> to vector<4x1x8x128xf32>
    %33 = vector.shape_cast %32 : vector<4x1x8x128xf32> to vector<4x8x128xf32>
    %34 = vector.extract_strided_slice %25 {offsets = [0, 0, 0], sizes = [1, 8, 128], strides = [1, 1, 1]} : vector<4x8x128xf32> to vector<1x8x128xf32>
    %35 = vector.shape_cast %34 : vector<1x8x128xf32> to vector<8x128xf32>
    %36 = vector.extract_strided_slice %25 {offsets = [1, 0, 0], sizes = [1, 8, 128], strides = [1, 1, 1]} : vector<4x8x128xf32> to vector<1x8x128xf32>
    %37 = vector.shape_cast %36 : vector<1x8x128xf32> to vector<8x128xf32>
    %38 = vector.extract_strided_slice %25 {offsets = [2, 0, 0], sizes = [1, 8, 128], strides = [1, 1, 1]} : vector<4x8x128xf32> to vector<1x8x128xf32>
    %39 = vector.shape_cast %38 : vector<1x8x128xf32> to vector<8x128xf32>
    %40 = vector.extract_strided_slice %25 {offsets = [3, 0, 0], sizes = [1, 8, 128], strides = [1, 1, 1]} : vector<4x8x128xf32> to vector<1x8x128xf32>
    %41 = vector.shape_cast %40 : vector<1x8x128xf32> to vector<8x128xf32>
    %cst_11 = arith.constant 0.000000e+00 : f32
    %42 = vector.broadcast %cst_11 : f32 to vector<4x8x128xf32>
    %43 = arith.subf %42, %29 : vector<4x8x128xf32>
    %44 = vector.shape_cast %35 : vector<8x128xf32> to vector<1x8x128xf32>
    %45 = vector.broadcast %44 : vector<1x8x128xf32> to vector<4x8x128xf32>
    %46 = arith.mulf %43, %45 : vector<4x8x128xf32>
    %47 = vector.shape_cast %37 : vector<8x128xf32> to vector<1x8x128xf32>
    %48 = vector.broadcast %47 : vector<1x8x128xf32> to vector<4x8x128xf32>
    %49 = arith.mulf %27, %48 : vector<4x8x128xf32>
    %50 = arith.addf %46, %49 : vector<4x8x128xf32>
    %51 = vector.shape_cast %39 : vector<8x128xf32> to vector<1x8x128xf32>
    %52 = vector.broadcast %51 : vector<1x8x128xf32> to vector<4x8x128xf32>
    %53 = arith.mulf %33, %52 : vector<4x8x128xf32>
    %54 = arith.subf %50, %53 : vector<4x8x128xf32>
    %55 = vector.shape_cast %41 : vector<8x128xf32> to vector<1x8x128xf32>
    %56 = vector.broadcast %55 : vector<1x8x128xf32> to vector<4x8x128xf32>
    %57 = arith.mulf %31, %56 : vector<4x8x128xf32>
    %58 = arith.addf %54, %57 : vector<4x8x128xf32>
    %cst_12 = arith.constant 0.000000e+00 : f32
    %59 = vector.broadcast %cst_12 : f32 to vector<4x8x128xf32>
    %60 = arith.subf %59, %31 : vector<4x8x128xf32>
    %61 = vector.shape_cast %35 : vector<8x128xf32> to vector<1x8x128xf32>
    %62 = vector.broadcast %61 : vector<1x8x128xf32> to vector<4x8x128xf32>
    %63 = arith.mulf %60, %62 : vector<4x8x128xf32>
    %64 = vector.shape_cast %37 : vector<8x128xf32> to vector<1x8x128xf32>
    %65 = vector.broadcast %64 : vector<1x8x128xf32> to vector<4x8x128xf32>
    %66 = arith.mulf %33, %65 : vector<4x8x128xf32>
    %67 = arith.addf %63, %66 : vector<4x8x128xf32>
    %68 = vector.shape_cast %39 : vector<8x128xf32> to vector<1x8x128xf32>
    %69 = vector.broadcast %68 : vector<1x8x128xf32> to vector<4x8x128xf32>
    %70 = arith.mulf %27, %69 : vector<4x8x128xf32>
    %71 = arith.addf %67, %70 : vector<4x8x128xf32>
    %72 = vector.shape_cast %41 : vector<8x128xf32> to vector<1x8x128xf32>
    %73 = vector.broadcast %72 : vector<1x8x128xf32> to vector<4x8x128xf32>
    %74 = arith.mulf %29, %73 : vector<4x8x128xf32>
    %75 = arith.subf %71, %74 : vector<4x8x128xf32>
    %cst_13 = arith.constant 0.000000e+00 : f32
    %76 = vector.broadcast %cst_13 : f32 to vector<4x8x128xf32>
    %77 = arith.subf %76, %33 : vector<4x8x128xf32>
    %78 = vector.shape_cast %35 : vector<8x128xf32> to vector<1x8x128xf32>
    %79 = vector.broadcast %78 : vector<1x8x128xf32> to vector<4x8x128xf32>
    %80 = arith.mulf %77, %79 : vector<4x8x128xf32>
    %81 = vector.shape_cast %37 : vector<8x128xf32> to vector<1x8x128xf32>
    %82 = vector.broadcast %81 : vector<1x8x128xf32> to vector<4x8x128xf32>
    %83 = arith.mulf %31, %82 : vector<4x8x128xf32>
    %84 = arith.subf %80, %83 : vector<4x8x128xf32>
    %85 = vector.shape_cast %39 : vector<8x128xf32> to vector<1x8x128xf32>
    %86 = vector.broadcast %85 : vector<1x8x128xf32> to vector<4x8x128xf32>
    %87 = arith.mulf %29, %86 : vector<4x8x128xf32>
    %88 = arith.addf %84, %87 : vector<4x8x128xf32>
    %89 = vector.shape_cast %41 : vector<8x128xf32> to vector<1x8x128xf32>
    %90 = vector.broadcast %89 : vector<1x8x128xf32> to vector<4x8x128xf32>
    %91 = arith.mulf %27, %90 : vector<4x8x128xf32>
    %92 = arith.addf %88, %91 : vector<4x8x128xf32>
    %93 = vector.extract_strided_slice %7 {offsets = [0, 0, 0, 0], sizes = [4, 1, 8, 128], strides = [1, 1, 1, 1]} : vector<4x3x8x128xf32> to vector<4x1x8x128xf32>
    %94 = vector.shape_cast %93 : vector<4x1x8x128xf32> to vector<4x8x128xf32>
    %95 = vector.extract_strided_slice %7 {offsets = [0, 1, 0, 0], sizes = [4, 1, 8, 128], strides = [1, 1, 1, 1]} : vector<4x3x8x128xf32> to vector<4x1x8x128xf32>
    %96 = vector.shape_cast %95 : vector<4x1x8x128xf32> to vector<4x8x128xf32>
    %97 = vector.extract_strided_slice %7 {offsets = [0, 2, 0, 0], sizes = [4, 1, 8, 128], strides = [1, 1, 1, 1]} : vector<4x3x8x128xf32> to vector<4x1x8x128xf32>
    %98 = vector.shape_cast %97 : vector<4x1x8x128xf32> to vector<4x8x128xf32>
    %99 = arith.mulf %94, %58 : vector<4x8x128xf32>
    %100 = arith.mulf %99, %58 : vector<4x8x128xf32>
    %101 = arith.mulf %96, %75 : vector<4x8x128xf32>
    %102 = arith.mulf %101, %75 : vector<4x8x128xf32>
    %103 = arith.addf %100, %102 : vector<4x8x128xf32>
    %104 = arith.mulf %98, %92 : vector<4x8x128xf32>
    %105 = arith.mulf %104, %92 : vector<4x8x128xf32>
    %106 = arith.addf %103, %105 : vector<4x8x128xf32>
    %107 = arith.maximumf %94, %96 : vector<4x8x128xf32>
    %cst_14 = arith.constant 0.000000e+00 : f32
    %108 = vector.broadcast %cst_14 : f32 to vector<4x8x128xf32>
    %109 = arith.maximumf %98, %108 : vector<4x8x128xf32>
    %110 = arith.maximumf %107, %109 : vector<4x8x128xf32>
    %cst_15 = arith.constant 1.000000e+00 : f32
    %111 = vector.broadcast %cst_15 : f32 to vector<4x8x128xf32>
    %112 = arith.addf %110, %111 : vector<4x8x128xf32>
    %113 = arith.subf %112, %94 : vector<4x8x128xf32>
    %114 = arith.subf %112, %96 : vector<4x8x128xf32>
    %115 = arith.subf %112, %98 : vector<4x8x128xf32>
    %116 = arith.minimumf %112, %113 : vector<4x8x128xf32>
    %117 = arith.minimumf %114, %115 : vector<4x8x128xf32>
    %118 = arith.minimumf %116, %117 : vector<4x8x128xf32>
    %119 = arith.maximumf %112, %113 : vector<4x8x128xf32>
    %120 = arith.maximumf %114, %115 : vector<4x8x128xf32>
    %121 = arith.maximumf %119, %120 : vector<4x8x128xf32>
    %cst_16 = arith.constant 2.000000e+00 : f32
    %122 = vector.broadcast %cst_16 : f32 to vector<4x8x128xf32>
    %123 = arith.subf %118, %122 : vector<4x8x128xf32>
    %cst_17 = arith.constant 2.000000e+00 : f32
    %124 = vector.broadcast %cst_17 : f32 to vector<4x8x128xf32>
    %125 = arith.subf %121, %124 : vector<4x8x128xf32>
    %cst_18 = arith.constant 5.000000e-01 : f32
    %126 = vector.broadcast %cst_18 : f32 to vector<4x8x128xf32>
    %127 = arith.subf %118, %126 : vector<4x8x128xf32>
    %128 = arith.minimumf %125, %127 : vector<4x8x128xf32>
    %129 = arith.addf %123, %128 : vector<4x8x128xf32>
    %cst_19 = arith.constant 5.000000e-01 : f32
    %130 = vector.broadcast %cst_19 : f32 to vector<4x8x128xf32>
    %131 = arith.mulf %130, %129 : vector<4x8x128xf32>
    %132 = arith.subf %128, %123 : vector<4x8x128xf32>
    %cst_20 = arith.constant 2.500000e-01 : f32
    %133 = vector.broadcast %cst_20 : f32 to vector<4x8x128xf32>
    %134 = arith.mulf %133, %132 : vector<4x8x128xf32>
    %135 = arith.subf %112, %131 : vector<4x8x128xf32>
    %136 = arith.subf %113, %131 : vector<4x8x128xf32>
    %137 = arith.subf %114, %131 : vector<4x8x128xf32>
    %138 = arith.subf %115, %131 : vector<4x8x128xf32>
    %139 = arith.mulf %135, %136 : vector<4x8x128xf32>
    %140 = arith.mulf %137, %138 : vector<4x8x128xf32>
    %141 = arith.addf %135, %136 : vector<4x8x128xf32>
    %142 = arith.mulf %140, %141 : vector<4x8x128xf32>
    %143 = arith.addf %137, %138 : vector<4x8x128xf32>
    %144 = arith.mulf %139, %143 : vector<4x8x128xf32>
    %145 = arith.addf %142, %144 : vector<4x8x128xf32>
    %cst_21 = arith.constant 5.000000e-01 : f32
    %146 = vector.broadcast %cst_21 : f32 to vector<4x8x128xf32>
    %147 = arith.mulf %146, %145 : vector<4x8x128xf32>
    %148 = arith.mulf %139, %140 : vector<4x8x128xf32>
    %149 = arith.cmpf olt, %147, %148 : vector<4x8x128xf32>
    %cst_22 = arith.constant 0.000000e+00 : f32
    %150 = vector.broadcast %cst_22 : f32 to vector<4x8x128xf32>
    %151 = arith.subf %150, %134 : vector<4x8x128xf32>
    %152 = arith.select %149, %134, %151 : vector<4x8x128xi1>, vector<4x8x128xf32>
    %153 = arith.addf %131, %152 : vector<4x8x128xf32>
    %cst_23 = arith.constant 5.000000e-01 : f32
    %154 = vector.broadcast %cst_23 : f32 to vector<4x8x128xf32>
    %155 = arith.mulf %134, %154 : vector<4x8x128xf32>
    %156 = arith.subf %112, %153 : vector<4x8x128xf32>
    %157 = arith.subf %113, %153 : vector<4x8x128xf32>
    %158 = arith.subf %114, %153 : vector<4x8x128xf32>
    %159 = arith.subf %115, %153 : vector<4x8x128xf32>
    %160 = arith.mulf %156, %157 : vector<4x8x128xf32>
    %161 = arith.mulf %158, %159 : vector<4x8x128xf32>
    %162 = arith.addf %156, %157 : vector<4x8x128xf32>
    %163 = arith.mulf %161, %162 : vector<4x8x128xf32>
    %164 = arith.addf %158, %159 : vector<4x8x128xf32>
    %165 = arith.mulf %160, %164 : vector<4x8x128xf32>
    %166 = arith.addf %163, %165 : vector<4x8x128xf32>
    %cst_24 = arith.constant 5.000000e-01 : f32
    %167 = vector.broadcast %cst_24 : f32 to vector<4x8x128xf32>
    %168 = arith.mulf %167, %166 : vector<4x8x128xf32>
    %169 = arith.mulf %160, %161 : vector<4x8x128xf32>
    %170 = arith.cmpf olt, %168, %169 : vector<4x8x128xf32>
    %cst_25 = arith.constant 0.000000e+00 : f32
    %171 = vector.broadcast %cst_25 : f32 to vector<4x8x128xf32>
    %172 = arith.subf %171, %155 : vector<4x8x128xf32>
    %173 = arith.select %170, %155, %172 : vector<4x8x128xi1>, vector<4x8x128xf32>
    %174 = arith.addf %153, %173 : vector<4x8x128xf32>
    %cst_26 = arith.constant 5.000000e-01 : f32
    %175 = vector.broadcast %cst_26 : f32 to vector<4x8x128xf32>
    %176 = arith.mulf %155, %175 : vector<4x8x128xf32>
    %177 = arith.subf %112, %174 : vector<4x8x128xf32>
    %178 = arith.subf %113, %174 : vector<4x8x128xf32>
    %179 = arith.subf %114, %174 : vector<4x8x128xf32>
    %180 = arith.subf %115, %174 : vector<4x8x128xf32>
    %181 = arith.mulf %177, %178 : vector<4x8x128xf32>
    %182 = arith.mulf %179, %180 : vector<4x8x128xf32>
    %183 = arith.addf %177, %178 : vector<4x8x128xf32>
    %184 = arith.mulf %182, %183 : vector<4x8x128xf32>
    %185 = arith.addf %179, %180 : vector<4x8x128xf32>
    %186 = arith.mulf %181, %185 : vector<4x8x128xf32>
    %187 = arith.addf %184, %186 : vector<4x8x128xf32>
    %cst_27 = arith.constant 5.000000e-01 : f32
    %188 = vector.broadcast %cst_27 : f32 to vector<4x8x128xf32>
    %189 = arith.mulf %188, %187 : vector<4x8x128xf32>
    %190 = arith.mulf %181, %182 : vector<4x8x128xf32>
    %191 = arith.cmpf olt, %189, %190 : vector<4x8x128xf32>
    %cst_28 = arith.constant 0.000000e+00 : f32
    %192 = vector.broadcast %cst_28 : f32 to vector<4x8x128xf32>
    %193 = arith.subf %192, %176 : vector<4x8x128xf32>
    %194 = arith.select %191, %176, %193 : vector<4x8x128xi1>, vector<4x8x128xf32>
    %195 = arith.addf %174, %194 : vector<4x8x128xf32>
    %cst_29 = arith.constant 5.000000e-01 : f32
    %196 = vector.broadcast %cst_29 : f32 to vector<4x8x128xf32>
    %197 = arith.mulf %176, %196 : vector<4x8x128xf32>
    %198 = arith.subf %112, %195 : vector<4x8x128xf32>
    %199 = arith.subf %113, %195 : vector<4x8x128xf32>
    %200 = arith.subf %114, %195 : vector<4x8x128xf32>
    %201 = arith.subf %115, %195 : vector<4x8x128xf32>
    %202 = arith.mulf %198, %199 : vector<4x8x128xf32>
    %203 = arith.mulf %200, %201 : vector<4x8x128xf32>
    %204 = arith.addf %198, %199 : vector<4x8x128xf32>
    %205 = arith.mulf %203, %204 : vector<4x8x128xf32>
    %206 = arith.addf %200, %201 : vector<4x8x128xf32>
    %207 = arith.mulf %202, %206 : vector<4x8x128xf32>
    %208 = arith.addf %205, %207 : vector<4x8x128xf32>
    %cst_30 = arith.constant 5.000000e-01 : f32
    %209 = vector.broadcast %cst_30 : f32 to vector<4x8x128xf32>
    %210 = arith.mulf %209, %208 : vector<4x8x128xf32>
    %211 = arith.mulf %202, %203 : vector<4x8x128xf32>
    %212 = arith.cmpf olt, %210, %211 : vector<4x8x128xf32>
    %cst_31 = arith.constant 0.000000e+00 : f32
    %213 = vector.broadcast %cst_31 : f32 to vector<4x8x128xf32>
    %214 = arith.subf %213, %197 : vector<4x8x128xf32>
    %215 = arith.select %212, %197, %214 : vector<4x8x128xi1>, vector<4x8x128xf32>
    %216 = arith.addf %195, %215 : vector<4x8x128xf32>
    %cst_32 = arith.constant 5.000000e-01 : f32
    %217 = vector.broadcast %cst_32 : f32 to vector<4x8x128xf32>
    %218 = arith.mulf %197, %217 : vector<4x8x128xf32>
    %219 = arith.subf %112, %216 : vector<4x8x128xf32>
    %220 = arith.subf %113, %216 : vector<4x8x128xf32>
    %221 = arith.subf %114, %216 : vector<4x8x128xf32>
    %222 = arith.subf %115, %216 : vector<4x8x128xf32>
    %223 = arith.mulf %219, %220 : vector<4x8x128xf32>
    %224 = arith.mulf %221, %222 : vector<4x8x128xf32>
    %225 = arith.addf %219, %220 : vector<4x8x128xf32>
    %226 = arith.mulf %224, %225 : vector<4x8x128xf32>
    %227 = arith.addf %221, %222 : vector<4x8x128xf32>
    %228 = arith.mulf %223, %227 : vector<4x8x128xf32>
    %229 = arith.addf %226, %228 : vector<4x8x128xf32>
    %cst_33 = arith.constant 5.000000e-01 : f32
    %230 = vector.broadcast %cst_33 : f32 to vector<4x8x128xf32>
    %231 = arith.mulf %230, %229 : vector<4x8x128xf32>
    %232 = arith.mulf %223, %224 : vector<4x8x128xf32>
    %233 = arith.cmpf olt, %231, %232 : vector<4x8x128xf32>
    %cst_34 = arith.constant 0.000000e+00 : f32
    %234 = vector.broadcast %cst_34 : f32 to vector<4x8x128xf32>
    %235 = arith.subf %234, %218 : vector<4x8x128xf32>
    %236 = arith.select %233, %218, %235 : vector<4x8x128xi1>, vector<4x8x128xf32>
    %237 = arith.addf %216, %236 : vector<4x8x128xf32>
    %cst_35 = arith.constant 5.000000e-01 : f32
    %238 = vector.broadcast %cst_35 : f32 to vector<4x8x128xf32>
    %239 = arith.mulf %218, %238 : vector<4x8x128xf32>
    %240 = arith.subf %112, %237 : vector<4x8x128xf32>
    %241 = arith.subf %113, %237 : vector<4x8x128xf32>
    %242 = arith.subf %114, %237 : vector<4x8x128xf32>
    %243 = arith.subf %115, %237 : vector<4x8x128xf32>
    %244 = arith.mulf %240, %241 : vector<4x8x128xf32>
    %245 = arith.mulf %242, %243 : vector<4x8x128xf32>
    %246 = arith.addf %240, %241 : vector<4x8x128xf32>
    %247 = arith.mulf %245, %246 : vector<4x8x128xf32>
    %248 = arith.addf %242, %243 : vector<4x8x128xf32>
    %249 = arith.mulf %244, %248 : vector<4x8x128xf32>
    %250 = arith.addf %247, %249 : vector<4x8x128xf32>
    %cst_36 = arith.constant 5.000000e-01 : f32
    %251 = vector.broadcast %cst_36 : f32 to vector<4x8x128xf32>
    %252 = arith.mulf %251, %250 : vector<4x8x128xf32>
    %253 = arith.mulf %244, %245 : vector<4x8x128xf32>
    %254 = arith.cmpf olt, %252, %253 : vector<4x8x128xf32>
    %cst_37 = arith.constant 0.000000e+00 : f32
    %255 = vector.broadcast %cst_37 : f32 to vector<4x8x128xf32>
    %256 = arith.subf %255, %239 : vector<4x8x128xf32>
    %257 = arith.select %254, %239, %256 : vector<4x8x128xi1>, vector<4x8x128xf32>
    %258 = arith.addf %237, %257 : vector<4x8x128xf32>
    %cst_38 = arith.constant 5.000000e-01 : f32
    %259 = vector.broadcast %cst_38 : f32 to vector<4x8x128xf32>
    %260 = arith.mulf %239, %259 : vector<4x8x128xf32>
    %261 = arith.subf %112, %258 : vector<4x8x128xf32>
    %262 = arith.subf %113, %258 : vector<4x8x128xf32>
    %263 = arith.subf %114, %258 : vector<4x8x128xf32>
    %264 = arith.subf %115, %258 : vector<4x8x128xf32>
    %265 = arith.mulf %261, %262 : vector<4x8x128xf32>
    %266 = arith.mulf %263, %264 : vector<4x8x128xf32>
    %267 = arith.addf %261, %262 : vector<4x8x128xf32>
    %268 = arith.mulf %266, %267 : vector<4x8x128xf32>
    %269 = arith.addf %263, %264 : vector<4x8x128xf32>
    %270 = arith.mulf %265, %269 : vector<4x8x128xf32>
    %271 = arith.addf %268, %270 : vector<4x8x128xf32>
    %cst_39 = arith.constant 5.000000e-01 : f32
    %272 = vector.broadcast %cst_39 : f32 to vector<4x8x128xf32>
    %273 = arith.mulf %272, %271 : vector<4x8x128xf32>
    %274 = arith.mulf %265, %266 : vector<4x8x128xf32>
    %275 = arith.cmpf olt, %273, %274 : vector<4x8x128xf32>
    %cst_40 = arith.constant 0.000000e+00 : f32
    %276 = vector.broadcast %cst_40 : f32 to vector<4x8x128xf32>
    %277 = arith.subf %276, %260 : vector<4x8x128xf32>
    %278 = arith.select %275, %260, %277 : vector<4x8x128xi1>, vector<4x8x128xf32>
    %279 = arith.addf %258, %278 : vector<4x8x128xf32>
    %280 = arith.subf %112, %279 : vector<4x8x128xf32>
    %281 = arith.subf %113, %279 : vector<4x8x128xf32>
    %282 = arith.subf %114, %279 : vector<4x8x128xf32>
    %283 = arith.subf %115, %279 : vector<4x8x128xf32>
    %284 = tpu.reciprocal %280 {approx = true} : vector<4x8x128xf32> -> vector<4x8x128xf32>
    %285 = tpu.reciprocal %281 {approx = true} : vector<4x8x128xf32> -> vector<4x8x128xf32>
    %286 = tpu.reciprocal %282 {approx = true} : vector<4x8x128xf32> -> vector<4x8x128xf32>
    %287 = tpu.reciprocal %283 {approx = true} : vector<4x8x128xf32> -> vector<4x8x128xf32>
    %288 = arith.addf %284, %285 : vector<4x8x128xf32>
    %289 = arith.addf %286, %287 : vector<4x8x128xf32>
    %290 = arith.addf %288, %289 : vector<4x8x128xf32>
    %cst_41 = arith.constant 5.000000e-01 : f32
    %291 = vector.broadcast %cst_41 : f32 to vector<4x8x128xf32>
    %292 = arith.mulf %291, %290 : vector<4x8x128xf32>
    %293 = arith.mulf %284, %284 : vector<4x8x128xf32>
    %294 = arith.mulf %285, %285 : vector<4x8x128xf32>
    %295 = arith.addf %293, %294 : vector<4x8x128xf32>
    %296 = arith.mulf %286, %286 : vector<4x8x128xf32>
    %297 = arith.mulf %287, %287 : vector<4x8x128xf32>
    %298 = arith.addf %296, %297 : vector<4x8x128xf32>
    %299 = arith.addf %295, %298 : vector<4x8x128xf32>
    %cst_42 = arith.constant 5.000000e-01 : f32
    %300 = vector.broadcast %cst_42 : f32 to vector<4x8x128xf32>
    %301 = arith.mulf %300, %299 : vector<4x8x128xf32>
    %302 = tpu.reciprocal %301 {approx = true} : vector<4x8x128xf32> -> vector<4x8x128xf32>
    %cst_43 = arith.constant 1.000000e+00 : f32
    %303 = vector.broadcast %cst_43 : f32 to vector<4x8x128xf32>
    %304 = arith.subf %292, %303 : vector<4x8x128xf32>
    %305 = arith.mulf %304, %302 : vector<4x8x128xf32>
    %306 = arith.subf %279, %305 : vector<4x8x128xf32>
    %307 = arith.subf %112, %306 : vector<4x8x128xf32>
    %308 = arith.subf %113, %306 : vector<4x8x128xf32>
    %309 = arith.subf %114, %306 : vector<4x8x128xf32>
    %310 = arith.subf %115, %306 : vector<4x8x128xf32>
    %311 = tpu.reciprocal %307 {approx = true} : vector<4x8x128xf32> -> vector<4x8x128xf32>
    %312 = tpu.reciprocal %308 {approx = true} : vector<4x8x128xf32> -> vector<4x8x128xf32>
    %313 = tpu.reciprocal %309 {approx = true} : vector<4x8x128xf32> -> vector<4x8x128xf32>
    %314 = tpu.reciprocal %310 {approx = true} : vector<4x8x128xf32> -> vector<4x8x128xf32>
    %315 = arith.mulf %307, %311 : vector<4x8x128xf32>
    %cst_44 = arith.constant 2.000000e+00 : f32
    %316 = vector.broadcast %cst_44 : f32 to vector<4x8x128xf32>
    %317 = arith.subf %316, %315 : vector<4x8x128xf32>
    %318 = arith.mulf %311, %317 : vector<4x8x128xf32>
    %319 = arith.mulf %308, %312 : vector<4x8x128xf32>
    %cst_45 = arith.constant 2.000000e+00 : f32
    %320 = vector.broadcast %cst_45 : f32 to vector<4x8x128xf32>
    %321 = arith.subf %320, %319 : vector<4x8x128xf32>
    %322 = arith.mulf %312, %321 : vector<4x8x128xf32>
    %323 = arith.mulf %309, %313 : vector<4x8x128xf32>
    %cst_46 = arith.constant 2.000000e+00 : f32
    %324 = vector.broadcast %cst_46 : f32 to vector<4x8x128xf32>
    %325 = arith.subf %324, %323 : vector<4x8x128xf32>
    %326 = arith.mulf %313, %325 : vector<4x8x128xf32>
    %327 = arith.mulf %310, %314 : vector<4x8x128xf32>
    %cst_47 = arith.constant 2.000000e+00 : f32
    %328 = vector.broadcast %cst_47 : f32 to vector<4x8x128xf32>
    %329 = arith.subf %328, %327 : vector<4x8x128xf32>
    %330 = arith.mulf %314, %329 : vector<4x8x128xf32>
    %331 = arith.addf %318, %322 : vector<4x8x128xf32>
    %332 = arith.addf %326, %330 : vector<4x8x128xf32>
    %333 = arith.addf %331, %332 : vector<4x8x128xf32>
    %cst_48 = arith.constant 5.000000e-01 : f32
    %334 = vector.broadcast %cst_48 : f32 to vector<4x8x128xf32>
    %335 = arith.mulf %334, %333 : vector<4x8x128xf32>
    %336 = arith.mulf %318, %318 : vector<4x8x128xf32>
    %337 = arith.mulf %322, %322 : vector<4x8x128xf32>
    %338 = arith.addf %336, %337 : vector<4x8x128xf32>
    %339 = arith.mulf %326, %326 : vector<4x8x128xf32>
    %340 = arith.mulf %330, %330 : vector<4x8x128xf32>
    %341 = arith.addf %339, %340 : vector<4x8x128xf32>
    %342 = arith.addf %338, %341 : vector<4x8x128xf32>
    %cst_49 = arith.constant 5.000000e-01 : f32
    %343 = vector.broadcast %cst_49 : f32 to vector<4x8x128xf32>
    %344 = arith.mulf %343, %342 : vector<4x8x128xf32>
    %345 = tpu.reciprocal %344 {approx = true} : vector<4x8x128xf32> -> vector<4x8x128xf32>
    %cst_50 = arith.constant 1.000000e+00 : f32
    %346 = vector.broadcast %cst_50 : f32 to vector<4x8x128xf32>
    %347 = arith.subf %335, %346 : vector<4x8x128xf32>
    %348 = arith.mulf %347, %345 : vector<4x8x128xf32>
    %349 = arith.subf %306, %348 : vector<4x8x128xf32>
    %350 = arith.subf %112, %349 : vector<4x8x128xf32>
    %351 = arith.subf %113, %349 : vector<4x8x128xf32>
    %352 = arith.subf %114, %349 : vector<4x8x128xf32>
    %353 = arith.subf %115, %349 : vector<4x8x128xf32>
    %354 = tpu.reciprocal %350 {approx = true} : vector<4x8x128xf32> -> vector<4x8x128xf32>
    %355 = arith.mulf %350, %354 : vector<4x8x128xf32>
    %cst_51 = arith.constant 2.000000e+00 : f32
    %356 = vector.broadcast %cst_51 : f32 to vector<4x8x128xf32>
    %357 = arith.subf %356, %355 : vector<4x8x128xf32>
    %358 = arith.mulf %354, %357 : vector<4x8x128xf32>
    %359 = tpu.reciprocal %351 {approx = true} : vector<4x8x128xf32> -> vector<4x8x128xf32>
    %360 = arith.mulf %351, %359 : vector<4x8x128xf32>
    %cst_52 = arith.constant 2.000000e+00 : f32
    %361 = vector.broadcast %cst_52 : f32 to vector<4x8x128xf32>
    %362 = arith.subf %361, %360 : vector<4x8x128xf32>
    %363 = arith.mulf %359, %362 : vector<4x8x128xf32>
    %364 = tpu.reciprocal %352 {approx = true} : vector<4x8x128xf32> -> vector<4x8x128xf32>
    %365 = arith.mulf %352, %364 : vector<4x8x128xf32>
    %cst_53 = arith.constant 2.000000e+00 : f32
    %366 = vector.broadcast %cst_53 : f32 to vector<4x8x128xf32>
    %367 = arith.subf %366, %365 : vector<4x8x128xf32>
    %368 = arith.mulf %364, %367 : vector<4x8x128xf32>
    %369 = tpu.reciprocal %353 {approx = true} : vector<4x8x128xf32> -> vector<4x8x128xf32>
    %370 = arith.mulf %353, %369 : vector<4x8x128xf32>
    %cst_54 = arith.constant 2.000000e+00 : f32
    %371 = vector.broadcast %cst_54 : f32 to vector<4x8x128xf32>
    %372 = arith.subf %371, %370 : vector<4x8x128xf32>
    %373 = arith.mulf %369, %372 : vector<4x8x128xf32>
    %374 = arith.mulf %358, %358 : vector<4x8x128xf32>
    %375 = arith.mulf %363, %363 : vector<4x8x128xf32>
    %376 = arith.mulf %368, %368 : vector<4x8x128xf32>
    %377 = arith.mulf %373, %373 : vector<4x8x128xf32>
    %378 = arith.addf %374, %375 : vector<4x8x128xf32>
    %379 = arith.addf %376, %377 : vector<4x8x128xf32>
    %380 = arith.addf %378, %379 : vector<4x8x128xf32>
    %cst_55 = arith.constant 5.000000e-01 : f32
    %381 = vector.broadcast %cst_55 : f32 to vector<4x8x128xf32>
    %382 = arith.mulf %381, %380 : vector<4x8x128xf32>
    %383 = arith.mulf %374, %358 : vector<4x8x128xf32>
    %384 = arith.mulf %375, %363 : vector<4x8x128xf32>
    %385 = arith.addf %383, %384 : vector<4x8x128xf32>
    %386 = arith.mulf %376, %368 : vector<4x8x128xf32>
    %387 = arith.mulf %377, %373 : vector<4x8x128xf32>
    %388 = arith.addf %386, %387 : vector<4x8x128xf32>
    %389 = arith.addf %385, %388 : vector<4x8x128xf32>
    %390 = arith.mulf %374, %374 : vector<4x8x128xf32>
    %391 = arith.mulf %375, %375 : vector<4x8x128xf32>
    %392 = arith.addf %390, %391 : vector<4x8x128xf32>
    %393 = arith.mulf %376, %376 : vector<4x8x128xf32>
    %394 = arith.mulf %377, %377 : vector<4x8x128xf32>
    %395 = arith.addf %393, %394 : vector<4x8x128xf32>
    %396 = arith.addf %392, %395 : vector<4x8x128xf32>
    %cst_56 = arith.constant 3.000000e+00 : f32
    %397 = vector.broadcast %cst_56 : f32 to vector<4x8x128xf32>
    %398 = arith.mulf %397, %396 : vector<4x8x128xf32>
    %399 = tpu.reciprocal %382 {approx = true} : vector<4x8x128xf32> -> vector<4x8x128xf32>
    %400 = arith.mulf %382, %399 : vector<4x8x128xf32>
    %cst_57 = arith.constant 2.000000e+00 : f32
    %401 = vector.broadcast %cst_57 : f32 to vector<4x8x128xf32>
    %402 = arith.subf %401, %400 : vector<4x8x128xf32>
    %403 = arith.mulf %399, %402 : vector<4x8x128xf32>
    %404 = arith.mulf %403, %403 : vector<4x8x128xf32>
    %cst_58 = arith.constant 1.250000e-01 : f32
    %405 = vector.broadcast %cst_58 : f32 to vector<4x8x128xf32>
    %406 = arith.mulf %405, %398 : vector<4x8x128xf32>
    %407 = arith.mulf %406, %404 : vector<4x8x128xf32>
    %408 = arith.mulf %389, %389 : vector<4x8x128xf32>
    %cst_59 = arith.constant 0.208333328 : f32
    %409 = vector.broadcast %cst_59 : f32 to vector<4x8x128xf32>
    %410 = arith.mulf %409, %408 : vector<4x8x128xf32>
    %411 = arith.mulf %404, %403 : vector<4x8x128xf32>
    %412 = arith.mulf %410, %411 : vector<4x8x128xf32>
    %413 = arith.subf %407, %412 : vector<4x8x128xf32>
    %414 = arith.mulf %350, %351 : vector<4x8x128xf32>
    %415 = arith.mulf %352, %353 : vector<4x8x128xf32>
    %416 = arith.mulf %414, %415 : vector<4x8x128xf32>
    %cst_60 = arith.constant 6.28318548 : f32
    %417 = vector.broadcast %cst_60 : f32 to vector<4x8x128xf32>
    %418 = arith.mulf %417, %382 : vector<4x8x128xf32>
    %419 = arith.mulf %416, %418 : vector<4x8x128xf32>
    %420 = math.log %419 : vector<4x8x128xf32>
    %cst_61 = arith.constant 5.000000e-01 : f32
    %421 = vector.broadcast %cst_61 : f32 to vector<4x8x128xf32>
    %422 = arith.mulf %421, %420 : vector<4x8x128xf32>
    %cst_62 = arith.constant 2.98260689 : f32
    %423 = vector.broadcast %cst_62 : f32 to vector<4x8x128xf32>
    %424 = arith.subf %423, %422 : vector<4x8x128xf32>
    %425 = arith.subf %424, %349 : vector<4x8x128xf32>
    %426 = arith.addf %425, %413 : vector<4x8x128xf32>
    %427 = arith.addf %112, %426 : vector<4x8x128xf32>
    %428 = arith.subf %106, %427 : vector<4x8x128xf32>
    %c0_63 = arith.constant 0 : index
    %429 = arith.index_cast %3 : i32 to index
    %c0_64 = arith.constant 0 : index
    %430 = vector.load %arg4[%c0_63, %429, %c0_64] : memref<4x8x128xf32, #tpu.memory_space<vmem>>, vector<4x8x128xf32>
    %431 = arith.addf %428, %430 : vector<4x8x128xf32>
    %cst_65 = arith.constant dense<0xFF800000> : vector<8x128xf32>
    %432 = vector.multi_reduction <maximumf>, %431, %cst_65 [0] : vector<4x8x128xf32> to vector<8x128xf32>
    %433 = vector.shape_cast %432 : vector<8x128xf32> to vector<1x8x128xf32>
    %434 = vector.broadcast %433 : vector<1x8x128xf32> to vector<4x8x128xf32>
    %435 = arith.subf %431, %434 : vector<4x8x128xf32>
    %436 = math.exp %435 : vector<4x8x128xf32>
    %cst_66 = arith.constant dense<0.000000e+00> : vector<8x128xf32>
    %437 = vector.multi_reduction <add>, %436, %cst_66 [0] : vector<4x8x128xf32> to vector<8x128xf32>
    %438 = math.log %437 : vector<8x128xf32>
    %439 = arith.addf %432, %438 : vector<8x128xf32>
    %440 = arith.index_cast %3 : i32 to index
    %c0_67 = arith.constant 0 : index
    %441 = vector.load %arg5[%440, %c0_67] : memref<8x128xf32, #tpu.memory_space<vmem>>, vector<8x128xf32>
    tpu.vector_store %arg5[%440, %c0_67], %439 {strides = array<i32>} : memref<8x128xf32, #tpu.memory_space<vmem>>, vector<8x128xf32>,
    %c1_i32_68 = arith.constant 1 : i32
    return
  }
  func.func @transform_0(%arg0: i32) -> (i32, i32, i32, i32) {
    %c0_i32 = arith.constant 0 : i32
    %c0_i32_0 = arith.constant 0 : i32
    %c0_i32_1 = arith.constant 0 : i32
    %c0_i32_2 = arith.constant 0 : i32
    return %c0_i32, %c0_i32_0, %arg0, %c0_i32_1 : i32, i32, i32, i32
  }
  func.func @transform_1(%arg0: i32) -> (i32, i32, i32, i32) {
    %c0_i32 = arith.constant 0 : i32
    %c0_i32_0 = arith.constant 0 : i32
    %c0_i32_1 = arith.constant 0 : i32
    %c0_i32_2 = arith.constant 0 : i32
    return %c0_i32, %c0_i32_0, %arg0, %c0_i32_1 : i32, i32, i32, i32
  }
  func.func @transform_2(%arg0: i32) -> (i32, i32, i32) {
    %c0_i32 = arith.constant 0 : i32
    %c0_i32_0 = arith.constant 0 : i32
    %c0_i32_1 = arith.constant 0 : i32
    return %c0_i32, %arg0, %c0_i32_0 : i32, i32, i32
  }
  func.func @transform_3(%arg0: i32) -> (i32, i32, i32) {
    %c0_i32 = arith.constant 0 : i32
    %c0_i32_0 = arith.constant 0 : i32
    %c0_i32_1 = arith.constant 0 : i32
    return %c0_i32, %arg0, %c0_i32_0 : i32, i32, i32
  }
  func.func @transform_4(%arg0: i32) -> (i32, i32) {
    %c0_i32 = arith.constant 0 : i32
    %c0_i32_0 = arith.constant 0 : i32
    return %arg0, %c0_i32 : i32, i32
  }
}

</mosaic_0001>

<bundles_post_ra>
// kernel: tpu_custom_call.1
= control target key start
LH: loop header
LB: loop body
LE: loop exit
PB: predicated region body
PF: predicated region fallthrough
CT: control target
= control target key end

     0   :  { %9 = vsyncpa [#allocation3], 0  ;;  %s3063_s0 = inlined_call_operand.hbm [shape: f32[4,4,8,128], index: 0, kind: input, shape index: {}]   ;;  %s3064_s1 = inlined_call_operand.hbm [shape: f32[4,3,8,128], index: 1, kind: input, shape index: {}]   ;;  %s3065_s2 = inlined_call_operand.hbm [shape: f32[4,8,128], index: 2, kind: input, shape index: {}]   ;;  %s3066_s3 = inlined_call_operand.hbm [shape: f32[4,8,128], index: 3, kind: input, shape index: {}]   ;;  %s3067_s4 = inlined_call_operand.hbm [shape: f32[8,128], index: 4, kind: output, shape index: {}]  }
   0x1   :  { %10 = vsyncpa [#allocation6], 0 }
   0x2   :  { %11 = vsyncpa [#allocation9], 0 }
   0x3   :  { %12 = vsyncpa [#allocation4], 0  ;;  %s30_s17 = sshll.u32 %s3064_s1, 4  ;;  %s1799_s18 = smov [#allocation5]   ;;  %s31_s17 = int_to_ptr.hbm [resolvable:$true] %s30_s17 }
   0x4   :  { %s32_s19 = sshll.u32 %s1799_s18, 4  ;;  %s17_s22 = sshll.u32 %s3063_s0, 4  ;;  %s33_s19 = int_to_ptr.vmem [resolvable:$true] %s32_s19  ;;  %s18_s22 = int_to_ptr.hbm [resolvable:$true] %s17_s22 }
   0x5   :  { %s1800_s23 = smov 128   ;;  %s1801_s24 = smov 8  }
   0x6   :  { %38 = dma.hbm_to_vmem [thread:$0]  %s31_s17, 1536, %s33_s19, [#allocation6], %s1800_s23, %s1800_s23, %s1801_s24  }
   0x7   :  { %s1802_s25 = smov [#allocation2]   ;;  %s43_s29 = sshll.u32 %s3065_s2, 4  ;;  %s44_s29 = int_to_ptr.hbm [resolvable:$true] %s43_s29 }
   0x8   :  { %s19_s26 = sshll.u32 %s1802_s25, 4  ;;  %s56_s5 = sshll.u32 %s3066_s3, 4  ;;  %s20_s26 = int_to_ptr.vmem [resolvable:$true] %s19_s26  ;;  %s57_s5 = int_to_ptr.hbm [resolvable:$true] %s56_s5 }
   0x9   :  { %25 = dma.hbm_to_vmem [thread:$0]  %s18_s22, 2048, %s20_s26, [#allocation3], %s1800_s23, %s1800_s23, %s1801_s24  }
   0xa   :  { %s1803_s6 = smov [#allocation7]   ;;  %s1804_s0 = smov [#allocation8]  }
   0xb   :  { %s45_s7 = sshll.u32 %s1803_s6, 4  ;;  %s58_s8 = sshll.u32 %s1804_s0, 4  ;;  %s46_s7 = int_to_ptr.vmem [resolvable:$true] %s45_s7  ;;  %s59_s8 = int_to_ptr.vmem [resolvable:$true] %s58_s8 }
   0xc   :  { %51 = dma.hbm_to_vmem [thread:$0]  %s44_s29, 512, %s46_s7, [#allocation6], %s1800_s23, %s1800_s23, %s1801_s24  }
   0xd   :  { %64 = dma.hbm_to_vmem [thread:$0]  %s57_s5, 512, %s59_s8, [#allocation9], %s1800_s23, %s1800_s23, %s1801_s24  }
   0xe   :  { %1791 = dma.done.wait [#allocation3], 2048  }
   0xf   :  { %1792 = vsyncadd [#allocation3], 4294965248 }
  0x10   :  { %1793 = dma.done.wait [#allocation6], 2048  }
  0x11   :  { %1794 = vsyncadd [#allocation6], 4294965248 }
  0x12   :  { %1795 = dma.done.wait [#allocation9], 512  }
  0x13   :  { %1796 = vsyncadd [#allocation9], 4294966784  ;;  %v1843_v0 = vld [vmem:[#allocation2] sm:$0xff]  ;;  %v1845_v1 = vld [vmem:[#allocation2 + $0x8] sm:$0xff]  ;;  %s1805_s2 = smov [#allocation10]   ;;  %s1484_s11 = sshll.u32 %s3067_s4, 4  ;;  %s1485_s11 = int_to_ptr.hbm [resolvable:$true] %s1484_s11 }
  0x14   :  { %v1847_v2 = vld [vmem:[#allocation2 + $0x10] sm:$0xff]  ;;  %v1849_v3 = vld [vmem:[#allocation2 + $0x18] sm:$0xff]  ;;  %v1851_v4 = vld [vmem:[#allocation2 + $0x20] sm:$0xff]  ;;  %v113_v6 = vmul.f32 %v1843_v0, %v1843_v0  ;;  %v114_v7 = vmul.f32 %v1845_v1, %v1845_v1  ;;  %s1482_s3 = sshll.u32 %s1805_s2, 4  ;;  %s1483_s3 = int_to_ptr.vmem [resolvable:$true] %s1482_s3 }
  0x15   :  { %v1853_v5 = vld [vmem:[#allocation2 + $0x28] sm:$0xff]  ;;  %v115_v8 = vmul.f32 %v1847_v2, %v1847_v2  ;;  %v1861_v9 = vld [vmem:[#allocation2 + $0x30] sm:$0xff]  ;;  %v1863_v10 = vld [vmem:[#allocation2 + $0x38] sm:$0xff]  ;;  %v117_v12 = vmul.f32 %v1851_v4, %v1851_v4  ;;  %v116_v17 = vmul.f32 %v1849_v3, %v1849_v3 }
  0x16   :  { %v1865_v11 = vld [vmem:[#allocation2 + $0x40] sm:$0xff]  ;;  %v118_v13 = vmul.f32 %v1853_v5, %v1853_v5  ;;  %v1871_v14 = vld [vmem:[#allocation2 + $0x48] sm:$0xff]  ;;  %v1873_v15 = vld [vmem:[#allocation2 + $0x50] sm:$0xff]  ;;  %v119_v18 = vmul.f32 %v1861_v9, %v1861_v9  ;;  %v129_v20 = vadd.f32 %v114_v7, %v113_v6  ;;  %v120_v24 = vmul.f32 %v1863_v10, %v1863_v10 }
  0x17   :  { %v1875_v16 = vld [vmem:[#allocation2 + $0x58] sm:$0xff]  ;;  %v121_v19 = vmul.f32 %v1865_v11, %v1865_v11  ;;  %v1883_v21 = vld [vmem:[#allocation2 + $0x60] sm:$0xff]  ;;  %v1885_v22 = vld [vmem:[#allocation2 + $0x68] sm:$0xff]  ;;  %v122_v25 = vmul.f32 %v1871_v14, %v1871_v14  ;;  %v123_v26 = vmul.f32 %v1873_v15, %v1873_v15 }
  0x18   :  { %v1887_v23 = vld [vmem:[#allocation2 + $0x70] sm:$0xff]  ;;  %v132_v27 = vadd.f32 %v118_v13, %v117_v12  ;;  %v1895_v28 = vld [vmem:[#allocation2 + $0x78] sm:$0xff]  ;;  %v1897_v29 = vld [vmem:[#allocation5] sm:$0xff]  ;;  %v125_v31 = vmul.f32 %v1883_v21, %v1883_v21  ;;  %v126_v32 = vmul.f32 %v1885_v22, %v1885_v22  ;;  %v130_v34 = vadd.f32 %v129_v20, %v115_v8 }
  0x19   :  { %v1899_v30 = vld [vmem:[#allocation5 + $0x8] sm:$0xff]  ;;  %v127_v33 = vmul.f32 %v1887_v23, %v1887_v23  ;;  %v1907_v35 = vld [vmem:[#allocation5 + $0x10] sm:$0xff]  ;;  %v1909_v36 = vld [vmem:[#allocation5 + $0x18] sm:$0xff]  ;;  %v124_v38 = vmul.f32 %v1875_v16, %v1875_v16  ;;  %v128_v39 = vmul.f32 %v1895_v28, %v1895_v28  ;;  %v135_v41 = vadd.f32 %v122_v25, %v121_v19 }
  0x1a   :  { %3117 = vst [vmem:[#allocation15_spill] sm:$0xff] %v1899_v30  ;;  %v1911_v37 = vld [vmem:[#allocation5 + $0x20] sm:$0xff]  ;;  %v133_v40 = vadd.f32 %v132_v27, %v119_v18  ;;  %v1917_v42 = vld [vmem:[#allocation5 + $0x28] sm:$0xff]  ;;  %v1919_v43 = vld [vmem:[#allocation5 + $0x30] sm:$0xff]  ;;  %v131_v45 = vadd.f32 %v130_v34, %v116_v17  ;;  %v138_v46 = vadd.f32 %v126_v32, %v125_v31  ;;  %v351_v47 = vmax.f32 %v1897_v29, %v1899_v30 }
  0x1b   :  { %3118 = vst [vmem:[#allocation16_spill] sm:$0xff] %v1907_v35  ;;  %v1921_v44 = vld [vmem:[#allocation5 + $0x38] sm:$0xff]  ;;  %v352_v48 = vmax.f32 %v1909_v36, %v1911_v37  ;;  %v1927_v49 = vld [vmem:[#allocation5 + $0x40] sm:$0xff]  ;;  %v1929_v50 = vld [vmem:[#allocation5 + $0x48] sm:$0xff]  ;;  %v136_v53 = vadd.f32 %v135_v41, %v123_v26  ;;  %v355_v55 = vmax.f32 %v1907_v35, 0.0  ;;  %v356_v60 = vmax.f32 %v1917_v42, 0.0 }
  0x1c   :  { %3119 = vst [vmem:[#allocation17_spill] sm:$0xff] %v1911_v37  ;;  %v1931_v51 = vld [vmem:[#allocation5 + $0x50] sm:$0xff]  ;;  %v134_v52 = vadd.f32 %v133_v40, %v120_v24  ;;  %v353_v54 = vmax.f32 %v1919_v43, %v1921_v44  ;;  %v1936_v56 = vld [vmem:[#allocation7] sm:$0xff]  ;;  %v1938_v57 = vld [vmem:[#allocation7 + $0x8] sm:$0xff]  ;;  %v139_v58 = vadd.f32 %v138_v46, %v127_v33  ;;  %v1940_v59 = vadd.f32 1e-12, %v131_v45 }
  0x1d   :  { %3120 = vst [vmem:[#allocation18_spill] sm:$0xff] %v1917_v42  ;;  %v357_v61 = vmax.f32 %v1927_v49, 0.0  ;;  %v1944_v62 = vld [vmem:[#allocation5 + $0x58] sm:$0xff]  ;;  %v1946_v63 = vld [vmem:[#allocation7 + $0x10] sm:$0xff]  ;;  %v137_v7 = vadd.f32 %v136_v53, %v124_v38  ;;  %v201_v12 = vmul.f32 %v1936_v56, %v1936_v56  ;;  %v202_v13 = vmul.f32 %v1938_v57, %v1938_v57 }
  0x1e   :  { %3121 = vst [vmem:[#allocation19_spill] sm:$0xff] %v1919_v43  ;;  %v1948_v6 = vld [vmem:[#allocation7 + $0x18] sm:$0xff]  ;;  %v1950_v8 = vadd.f32 1e-12, %v134_v52  ;;  %v140_v17 = vadd.f32 %v139_v58, %v128_v39  ;;  %1523 = vrsqrt.f32 %v1940_v59  ;;  %v203_v18 = vmul.f32 %v1946_v63, %v1946_v63 }
  0x1f   :  { %3122 = vst [vmem:[#allocation20_spill] sm:$0xff] %v1921_v44  ;;  %v354_v19 = vmax.f32 %v1929_v50, %v1931_v51  ;;  %v1961_v20 = vadd.f32 1e-12, %v137_v7  ;;  %v204_v24 = vmul.f32 %v1948_v6, %v1948_v6  ;;  %v205_v26 = vadd.f32 %v202_v13, %v201_v12 }
  0x20   :  { %3123 = vst [vmem:[#allocation21_spill] sm:$0xff] %v1927_v49  ;;  %1525 = vrsqrt.f32 %v1950_v8  ;;  %v1966_v25 = vadd.f32 1e-12, %v140_v17  ;;  %v358_v27 = vmax.f32 %v1944_v62, 0.0  ;;  %v359_v31 = vmax.f32 %v351_v47, %v355_v55 }
  0x21   :  { %3124 = vst [vmem:[#allocation22_spill] sm:$0xff] %v1929_v50  ;;  %1527 = vrsqrt.f32 %v1961_v20  ;;  %v360_v32 = vmax.f32 %v352_v48, %v356_v60  ;;  %v361_v33 = vmax.f32 %v353_v54, %v357_v61  ;;  %v206_v34 = vadd.f32 %v205_v26, %v203_v18 }
  0x22   :  { %3125 = vst [vmem:[#allocation23_spill] sm:$0xff] %v1931_v51  ;;  %1529 = vrsqrt.f32 %v1966_v25  ;;  %v362_v38 = vmax.f32 %v354_v19, %v358_v27  ;;  %v1971_v39 = vadd.f32 1.0, %v359_v31  ;;  %vm151_vm0 = vweird.f32 %v1940_v59 }
  0x23   :  { %3126 = vst [vmem:[#allocation24_spill] sm:$0xff] %v1944_v62  ;;  %v1973_v40 = vadd.f32 1.0, %v360_v32  ;;  %v1975_v41 = vadd.f32 1.0, %v361_v33  ;;  %v207_v46 = vadd.f32 %v206_v34, %v204_v24  ;;  %vm161_vm1 = vweird.f32 %v1950_v8 }
  0x24   :  { %3127 = vst [vmem:[#allocation25_spill] sm:$0xff] %v1971_v39  ;;  %v1524_v45 = vpop.eup %1523  ;;  %v1978_v52 = vadd.f32 1.0, %v362_v38  ;;  %vm171_vm2 = vweird.f32 %v1961_v20  ;;  %vm181_vm3 = vweird.f32 %v1966_v25  ;;  %v1989_v55 = vsub.f32 %v1971_v39, %v1897_v29 }
  0x25   :  { %3128 = vst [vmem:[#allocation26_spill] sm:$0xff] %v1973_v40  ;;  %v146_v48 = vmul.f32 %v1524_v45, %v1940_v59  ;;  %vm152_vm4 = vweird.f32 %v1524_v45  ;;  %v1985_v54 = vadd.f32 1e-12, %v207_v46  ;;  %v1993_v61 = vsub.f32 %v1973_v40, %v1909_v36 }
  0x26   :  { %3129 = vst [vmem:[#allocation27_spill] sm:$0xff] %v1975_v41  ;;  %v1526_v47 = vpop.eup %1525  ;;  %v1997_v7 = vsub.f32 %v1975_v41, %v1919_v43  ;;  %v2003_v18 = vsub.f32 %v1978_v52, %v1929_v50  ;;  %v2008_v26 = vsub.f32 %v1971_v39, %v1899_v30  ;;  %v2012_v27 = vsub.f32 %v1973_v40, %v1911_v37  ;;  %vm153_vm8 = vmor %vm151_vm0, %vm152_vm4 }
  0x27   :  { %3130 = vst [vmem:[#allocation28_spill] sm:$0xff] %v1978_v52  ;;  %v156_v53 = vmul.f32 %v1526_v47, %v1950_v8  ;;  %v1528_v58 = vpop.eup %1527  ;;  %v147_v60 = vmul.f32 %v1524_v45, %v146_v48  ;;  %vm162_vm5 = vweird.f32 %v1526_v47  ;;  %1531 = vrsqrt.f32 %v1985_v54 }
  0x28   :  { %3131 = vst [vmem:[#allocation29_spill] sm:$0xff] %v1997_v7  ;;  %v1530_v12 = vpop.eup %1529  ;;  %v166_v17 = vmul.f32 %v1528_v58, %v1961_v20  ;;  %vm172_vm6 = vweird.f32 %v1528_v58  ;;  %v2016_v38 = vsub.f32 %v1975_v41, %v1921_v44  ;;  %v2020_v46 = vsub.f32 %v1978_v52, %v1931_v51  ;;  %vm163_vm9 = vmor %vm161_vm1, %vm162_vm5 }
  0x29   :  { %v157_v13 = vmul.f32 %v1526_v47, %v156_v53  ;;  %3132 = vst [vmem:[#allocation30_spill] sm:$0xff] %v2003_v18  ;;  %v148_v19 = vmul.f32 0.5, %v147_v60  ;;  %v176_v24 = vmul.f32 %v1530_v12, %v1966_v25  ;;  %vm182_vm7 = vweird.f32 %v1530_v12  ;;  %vm173_vm10 = vmor %vm171_vm2, %vm172_vm6 }
  0x2a   :  { %3133 = vst [vmem:[#allocation31_spill] sm:$0xff] %v2008_v26  ;;  %v167_v32 = vmul.f32 %v1528_v58, %v166_v17  ;;  %v2027_v60 = vsub.f32 %v1971_v39, %v1907_v35  ;;  %v2038_v59 = vsub.f32 %v1975_v41, %v1927_v49  ;;  %v380_v8 = vmin.f32 %v1973_v40, %v1993_v61  ;;  %vm183_vm12 = vmor %vm181_vm3, %vm182_vm7 }
  0x2b   :  { %3134 = vst [vmem:[#allocation32_spill] sm:$0xff] %v2012_v27  ;;  %v158_v31 = vmul.f32 0.5, %v157_v13  ;;  %v149_v33 = vsub.f32 1.5, %v148_v19  ;;  %v177_v34 = vmul.f32 %v1530_v12, %v176_v24  ;;  %v2031_v13 = vsub.f32 %v1973_v40, %v1917_v42 }
  0x2c   :  { %3135 = vst [vmem:[#allocation33_spill] sm:$0xff] %v2016_v38  ;;  %v168_v53 = vmul.f32 0.5, %v167_v32  ;;  %v2042_v24 = vsub.f32 %v1978_v52, %v1944_v62  ;;  %vm215_vm11 = vweird.f32 %v1985_v54  ;;  %v381_v62 = vmin.f32 %v1975_v41, %v1997_v7 }
  0x2d   :  { %3136 = vst [vmem:[#allocation34_spill] sm:$0xff] %v2020_v46  ;;  %v159_v48 = vsub.f32 1.5, %v158_v31  ;;  %v150_v17 = vmul.f32 %v1524_v45, %v149_v33  ;;  %v178_v19 = vmul.f32 0.5, %v177_v34  ;;  %v2044_v31 = vpop.eup %1531  ;;  %v379_v33 = vmin.f32 %v1971_v39, %v1989_v55 }
  0x2e   :  { %3137 = vst [vmem:[#allocation35_spill] sm:$0xff] %v2027_v60  ;;  %v169_v35 = vsub.f32 1.5, %v168_v53  ;;  %vm216_vm13 = vweird.f32 %v2044_v31  ;;  %v386_v44 = vmin.f32 %v2020_v46, %v2042_v24  ;;  %v392_v43 = vmax.f32 %v1973_v40, %v1993_v61 }
  0x2f   :  { %3138 = vst [vmem:[#allocation36_spill] sm:$0xff] %v2031_v13  ;;  %v160_v32 = vmul.f32 %v1526_v47, %v159_v48  ;;  %v154_v42 = vsel %vm153_vm8, %v1524_v45, %v150_v17  ;;  %v179_v34 = vsub.f32 1.5, %v178_v19  ;;  %v382_v48 = vmin.f32 %v1978_v52, %v2003_v18  ;;  %vm217_vm14 = vmor %vm215_vm11, %vm216_vm13 }
  0x30   :  { %3139 = vst [vmem:[#allocation37_spill] sm:$0xff] %v2038_v59  ;;  %v170_v49 = vmul.f32 %v1528_v58, %v169_v35  ;;  %v210_v45 = vmul.f32 %v2044_v31, %v1985_v54  ;;  %v2065_v17 = vmul.f32 %v154_v42, %v1843_v0  ;;  %v2068_v19 = vmul.f32 %v154_v42, %v1845_v1 }
  0x31   :  { %3140 = vst [vmem:[#allocation38_spill] sm:$0xff] %v2042_v24  ;;  %v164_v53 = vsel %vm163_vm9, %v1526_v47, %v160_v32  ;;  %v180_v20 = vmul.f32 %v1530_v12, %v179_v34  ;;  %v2071_v51 = vmul.f32 %v154_v42, %v1847_v2  ;;  %v2074_v47 = vmul.f32 %v154_v42, %v1849_v3 }
  0x32   :  { %v174_v35 = vsel %vm173_vm10, %v1528_v58, %v170_v49  ;;  %v2077_v25 = vmul.f32 %v164_v53, %v1851_v4  ;;  %v2080_v32 = vmul.f32 %v164_v53, %v1853_v5  ;;  %v2083_v0 = vmul.f32 %v164_v53, %v1861_v9 }
  0x33   :  { %v184_v34 = vsel %vm183_vm12, %v1530_v12, %v180_v20  ;;  %v2086_v1 = vmul.f32 %v174_v35, %v1871_v14  ;;  %v2089_v2 = vmul.f32 %v174_v35, %v1873_v15  ;;  %v2092_v49 = vmul.f32 %v164_v53, %v1863_v10 }
  0x34   :  { %v2095_v3 = vmul.f32 %v174_v35, %v1865_v11  ;;  %v2098_v4 = vmul.f32 %v184_v34, %v1885_v22  ;;  %v2101_v5 = vmul.f32 %v184_v34, %v1887_v23  ;;  %v2104_v9 = vmul.f32 %v174_v35, %v1875_v16 }
  0x35   :  { %v2107_v14 = vmul.f32 %v184_v34, %v1883_v21  ;;  %v2110_v15 = vmul.f32 %v184_v34, %v1895_v28  ;;  %v211_v10 = vmul.f32 %v2044_v31, %v210_v45  ;;  %v223_v11 = vsub.f32 0.0, %v2068_v19 }
  0x36   :  { %v224_v42 = vsub.f32 0.0, %v2080_v32  ;;  %v225_v22 = vsub.f32 0.0, %v2086_v1  ;;  %v226_v23 = vsub.f32 0.0, %v2098_v4  ;;  %v255_v16 = vsub.f32 0.0, %v2071_v51 }
  0x37   :  { %v212_v58 = vmul.f32 0.5, %v211_v10  ;;  %v256_v12 = vsub.f32 0.0, %v2083_v0  ;;  %v257_v21 = vsub.f32 0.0, %v2089_v2  ;;  %v258_v28 = vsub.f32 0.0, %v2101_v5 }
  0x38   :  { %v383_v20 = vmin.f32 %v2008_v26, %v2027_v60  ;;  %v384_v34 = vmin.f32 %v2012_v27, %v2031_v13  ;;  %v385_v10 = vmin.f32 %v2016_v38, %v2038_v59  ;;  %v393_v54 = vmax.f32 %v1975_v41, %v1997_v7 }
  0x39   :  { %v213_v35 = vsub.f32 1.5, %v212_v58  ;;  %v391_v58 = vmax.f32 %v1971_v39, %v1989_v55  ;;  %v394_v45 = vmax.f32 %v1978_v52, %v2003_v18  ;;  %v2159_v53 = vmin.f32 %v382_v48, %v386_v44 }
  0x3a   :  { %v2137_v37 = vmin.f32 %v379_v33, %v383_v20  ;;  %v2142_v50 = vmin.f32 %v380_v8, %v384_v34  ;;  %v395_v33 = vmax.f32 %v2008_v26, %v2027_v60  ;;  %v396_v20 = vmax.f32 %v2012_v27, %v2031_v13 }
  0x3b   :  { %v214_v30 = vmul.f32 %v2044_v31, %v213_v35  ;;  %v397_v35 = vmax.f32 %v2016_v38, %v2038_v59  ;;  %v2157_v34 = vmin.f32 %v381_v62, %v385_v10  ;;  %v398_v7 = vmax.f32 %v2020_v46, %v2042_v24 }
  0x3c   :  { %v2177_v62 = vmax.f32 %v392_v43, %v396_v20 }
  0x3d   :  { %v218_v8 = vsel %vm217_vm14, %v2044_v31, %v214_v30  ;;  %v2175_v30 = vmax.f32 %v391_v58, %v395_v33  ;;  %v2179_v44 = vmax.f32 %v393_v54, %v397_v35  ;;  %v2181_v31 = vmax.f32 %v394_v45, %v398_v7 }
  0x3e   :  { %v2164_v18 = vmul.f32 %v218_v8, %v1936_v56  ;;  %v2167_v60 = vmul.f32 %v218_v8, %v1938_v57  ;;  %v2170_v13 = vmul.f32 %v218_v8, %v1946_v63  ;;  %v2173_v59 = vmul.f32 %v218_v8, %v1948_v6 }
  0x40   :  { %v227_v56 = vmul.f32 %v223_v11, %v2164_v18  ;;  %v228_v48 = vmul.f32 %v224_v42, %v2164_v18  ;;  %v229_v57 = vmul.f32 %v225_v22, %v2164_v18  ;;  %v230_v63 = vmul.f32 %v226_v23, %v2164_v18 }
  0x41   :  { %v231_v6 = vmul.f32 %v2167_v60, %v2065_v17  ;;  %v232_v10 = vmul.f32 %v2167_v60, %v2077_v25  ;;  %v233_v43 = vmul.f32 %v2167_v60, %v2095_v3  ;;  %v234_v7 = vmul.f32 %v2167_v60, %v2107_v14 }
  0x42   :  { %v239_v11 = vmul.f32 %v2170_v13, %v2074_v47  ;;  %v240_v42 = vmul.f32 %v2170_v13, %v2092_v49  ;;  %v241_v22 = vmul.f32 %v2170_v13, %v2104_v9  ;;  %v242_v23 = vmul.f32 %v2170_v13, %v2110_v15 }
  0x43   :  { %v235_v45 = vadd.f32 %v231_v6, %v227_v56  ;;  %v236_v58 = vadd.f32 %v232_v10, %v228_v48  ;;  %v237_v54 = vadd.f32 %v233_v43, %v229_v57  ;;  %v238_v33 = vadd.f32 %v234_v7, %v230_v63 }
  0x44   :  { %v247_v20 = vmul.f32 %v2173_v59, %v2071_v51  ;;  %v248_v35 = vmul.f32 %v2173_v59, %v2083_v0  ;;  %v249_v8 = vmul.f32 %v2173_v59, %v2089_v2  ;;  %v250_v24 = vmul.f32 %v2173_v59, %v2101_v5 }
  0x45   :  { %v243_v46 = vsub.f32 %v235_v45, %v239_v11  ;;  %v244_v38 = vsub.f32 %v236_v58, %v240_v42  ;;  %v245_v27 = vsub.f32 %v237_v54, %v241_v22  ;;  %v246_v26 = vsub.f32 %v238_v33, %v242_v23 }
  0x46   :  { %v259_v56 = vmul.f32 %v255_v16, %v2164_v18  ;;  %v260_v48 = vmul.f32 %v256_v12, %v2164_v18  ;;  %v261_v57 = vmul.f32 %v257_v21, %v2164_v18  ;;  %v262_v63 = vmul.f32 %v258_v28, %v2164_v18 }
  0x47   :  { %v251_v6 = vadd.f32 %v247_v20, %v243_v46  ;;  %v252_v10 = vadd.f32 %v248_v35, %v244_v38  ;;  %v253_v43 = vadd.f32 %v249_v8, %v245_v27  ;;  %v254_v7 = vadd.f32 %v250_v24, %v246_v26 }
  0x48   :  { %v263_v52 = vmul.f32 %v2167_v60, %v2074_v47  ;;  %v264_v11 = vmul.f32 %v2167_v60, %v2092_v49  ;;  %v265_v42 = vmul.f32 %v2167_v60, %v2104_v9  ;;  %v266_v16 = vmul.f32 %v2167_v60, %v2110_v15 }
  0x49   :  { %v271_v12 = vmul.f32 %v2170_v13, %v2065_v17  ;;  %v272_v38 = vmul.f32 %v2170_v13, %v2077_v25  ;;  %v273_v26 = vmul.f32 %v2170_v13, %v2095_v3  ;;  %v274_v27 = vmul.f32 %v2170_v13, %v2107_v14 }
  0x4a   :  { %v267_v46 = vadd.f32 %v263_v52, %v259_v56  ;;  %v268_v24 = vadd.f32 %v264_v11, %v260_v48  ;;  %v269_v21 = vadd.f32 %v265_v42, %v261_v57  ;;  %v270_v28 = vadd.f32 %v266_v16, %v262_v63 }
  0x4b   :  { %v279_v22 = vmul.f32 %v2173_v59, %v2068_v19  ;;  %v280_v23 = vmul.f32 %v2173_v59, %v2080_v32  ;;  %v281_v45 = vmul.f32 %v2173_v59, %v2086_v1  ;;  %v282_v58 = vmul.f32 %v2173_v59, %v2098_v4 }
  0x4c   :  { %v275_v54 = vadd.f32 %v271_v12, %v267_v46  ;;  %v276_v33 = vadd.f32 %v272_v38, %v268_v24  ;;  %v277_v20 = vadd.f32 %v273_v26, %v269_v21  ;;  %v278_v35 = vadd.f32 %v274_v27, %v270_v28 }
  0x4d   :  { %v3141_v52 = vsub.f32 0.0, %v2074_v47  ;;  %v3142_v56 = vsub.f32 0.0, %v2092_v49  ;;  %v3143_v57 = vsub.f32 0.0, %v2104_v9  ;;  %v3144_v11 = vsub.f32 0.0, %v2110_v15 }
  0x4e   :  { %v283_v16 = vsub.f32 %v275_v54, %v279_v22  ;;  %v284_v12 = vsub.f32 %v276_v33, %v280_v23  ;;  %v285_v38 = vsub.f32 %v277_v20, %v281_v45  ;;  %v286_v26 = vsub.f32 %v278_v35, %v282_v58  ;;  %v3145_v45 = vld [vmem:[#allocation19_spill] sm:$0xff] }
  0x4f   :  { %v291_v8 = vmul.f32 %v3141_v52, %v2164_v18  ;;  %v292_v48 = vmul.f32 %v3142_v56, %v2164_v18  ;;  %v293_v63 = vmul.f32 %v3143_v57, %v2164_v18  ;;  %v294_v42 = vmul.f32 %v3144_v11, %v2164_v18  ;;  %v3150_v11 = vld [vmem:[#allocation23_spill] sm:$0xff] }
  0x50   :  { %v295_v47 = vmul.f32 %v2167_v60, %v2071_v51  ;;  %v296_v27 = vmul.f32 %v2167_v60, %v2083_v0  ;;  %v297_v49 = vmul.f32 %v2167_v60, %v2089_v2  ;;  %v298_v9 = vmul.f32 %v2167_v60, %v2101_v5 }
  0x51   :  { %v303_v15 = vmul.f32 %v2170_v13, %v2068_v19  ;;  %v304_v18 = vmul.f32 %v2170_v13, %v2080_v32  ;;  %v305_v46 = vmul.f32 %v2170_v13, %v2086_v1  ;;  %v306_v51 = vmul.f32 %v2170_v13, %v2098_v4 }
  0x52   :  { %v299_v24 = vsub.f32 %v291_v8, %v295_v47  ;;  %v300_v0 = vsub.f32 %v292_v48, %v296_v27  ;;  %v301_v21 = vsub.f32 %v293_v63, %v297_v49  ;;  %v302_v28 = vsub.f32 %v294_v42, %v298_v9  ;;  %v3148_v48 = vld [vmem:[#allocation17_spill] sm:$0xff]  ;;  %v3149_v63 = vld [vmem:[#allocation20_spill] sm:$0xff]  ;;  %v3152_v27 = vld [vmem:[#allocation18_spill] sm:$0xff] }
  0x53   :  { %v311_v2 = vmul.f32 %v2173_v59, %v2065_v17  ;;  %v312_v60 = vmul.f32 %v2173_v59, %v2077_v25  ;;  %v313_v19 = vmul.f32 %v2173_v59, %v2095_v3  ;;  %v314_v32 = vmul.f32 %v2173_v59, %v2107_v14  ;;  %v3146_v17 = vld [vmem:[#allocation22_spill] sm:$0xff]  ;;  %v3147_v14 = vld [vmem:[#allocation15_spill] sm:$0xff]  ;;  %v3151_v42 = vld [vmem:[#allocation16_spill] sm:$0xff] }
  0x54   :  { %v307_v1 = vadd.f32 %v303_v15, %v299_v24  ;;  %v308_v5 = vadd.f32 %v304_v18, %v300_v0  ;;  %v309_v22 = vadd.f32 %v305_v46, %v301_v21  ;;  %v310_v13 = vadd.f32 %v306_v51, %v302_v28  ;;  %v3153_v9 = vld [vmem:[#allocation21_spill] sm:$0xff]  ;;  %v3154_v18 = vld [vmem:[#allocation24_spill] sm:$0xff] }
  0x55   :  { %v319_v4 = vmul.f32 %v251_v6, %v1897_v29  ;;  %v320_v23 = vmul.f32 %v252_v10, %v1909_v36  ;;  %v321_v58 = vmul.f32 %v253_v43, %v3145_v45  ;;  %v322_v54 = vmul.f32 %v254_v7, %v3146_v17 }
  0x56   :  { %v315_v33 = vadd.f32 %v311_v2, %v307_v1  ;;  %v316_v25 = vadd.f32 %v312_v60, %v308_v5  ;;  %v317_v20 = vadd.f32 %v313_v19, %v309_v22  ;;  %v318_v35 = vadd.f32 %v314_v32, %v310_v13 }
  0x57   :  { %v323_v3 = vmul.f32 %v319_v4, %v251_v6  ;;  %v324_v52 = vmul.f32 %v320_v23, %v252_v10  ;;  %v325_v8 = vmul.f32 %v321_v58, %v253_v43  ;;  %v326_v59 = vmul.f32 %v322_v54, %v254_v7 }
  0x58   :  { %v327_v56 = vmul.f32 %v283_v16, %v3147_v14  ;;  %v328_v57 = vmul.f32 %v284_v12, %v3148_v48  ;;  %v329_v29 = vmul.f32 %v285_v38, %v3149_v63  ;;  %v330_v36 = vmul.f32 %v286_v26, %v3150_v11 }
  0x59   :  { %v339_v47 = vmul.f32 %v315_v33, %v3151_v42  ;;  %v340_v49 = vmul.f32 %v316_v25, %v3152_v27  ;;  %v341_v15 = vmul.f32 %v317_v20, %v3153_v9  ;;  %v342_v46 = vmul.f32 %v318_v35, %v3154_v18  ;;  %v3159_v27 = vld [vmem:[#allocation28_spill] sm:$0xff]  ;;  %v3160_v9 = vld [vmem:[#allocation29_spill] sm:$0xff]  ;;  %v3161_v18 = vld [vmem:[#allocation30_spill] sm:$0xff] }
  0x5a   :  { %v331_v6 = vmul.f32 %v327_v56, %v283_v16  ;;  %v332_v10 = vmul.f32 %v328_v57, %v284_v12  ;;  %v333_v43 = vmul.f32 %v329_v29, %v285_v38  ;;  %v334_v7 = vmul.f32 %v330_v36, %v286_v26 }
  0x5b   :  { %v343_v51 = vmul.f32 %v339_v47, %v315_v33  ;;  %v344_v24 = vmul.f32 %v340_v49, %v316_v25  ;;  %v345_v0 = vmul.f32 %v341_v15, %v317_v20  ;;  %v346_v21 = vmul.f32 %v342_v46, %v318_v35 }
  0x5c   :  { %v335_v28 = vadd.f32 %v331_v6, %v323_v3  ;;  %v336_v2 = vadd.f32 %v332_v10, %v324_v52  ;;  %v337_v60 = vadd.f32 %v333_v43, %v325_v8  ;;  %v338_v19 = vadd.f32 %v334_v7, %v326_v59  ;;  %v3162_v6 = vld [vmem:[#allocation31_spill] sm:$0xff]  ;;  %v3163_v43 = vld [vmem:[#allocation32_spill] sm:$0xff] }
  0x5d   :  { %v1496_v32 = vadd.f32 -2.0, %v2137_v37  ;;  %v1497_v1 = vadd.f32 -2.0, %v2142_v50  ;;  %v1500_v5 = vadd.f32 -2.0, %v2175_v30  ;;  %v1501_v22 = vadd.f32 -2.0, %v2177_v62 }
  0x5e   :  { %v2291_v16 = vadd.f32 %v343_v51, %v335_v28  ;;  %v2293_v12 = vadd.f32 %v344_v24, %v336_v2  ;;  %v2295_v38 = vadd.f32 %v345_v0, %v337_v60  ;;  %v2297_v26 = vadd.f32 %v346_v21, %v338_v19  ;;  %v3164_v51 = vld [vmem:[#allocation33_spill] sm:$0xff]  ;;  %v3165_v0 = vld [vmem:[#allocation34_spill] sm:$0xff]  ;;  %v3166_v28 = vld [vmem:[#allocation35_spill] sm:$0xff] }
  0x5f   :  { %v1502_v13 = vadd.f32 -2.0, %v2179_v44  ;;  %v1503_v4 = vadd.f32 -2.0, %v2181_v31  ;;  %v1504_v23 = vadd.f32 -0.5, %v2137_v37  ;;  %v1505_v45 = vadd.f32 -0.5, %v2142_v50  ;;  %v3167_v60 = vld [vmem:[#allocation36_spill] sm:$0xff] }
  0x60   :  { %3155 = vst [vmem:[#allocation19_spill] sm:$0xff] %v2291_v16  ;;  %v1498_v30 = vadd.f32 -2.0, %v2157_v34  ;;  %v1499_v62 = vadd.f32 -2.0, %v2159_v53  ;;  %v1506_v58 = vadd.f32 -0.5, %v2157_v34  ;;  %v1507_v17 = vadd.f32 -0.5, %v2159_v53 }
  0x61   :  { %3156 = vst [vmem:[#allocation22_spill] sm:$0xff] %v2293_v12  ;;  %v415_v54 = vmin.f32 %v1500_v5, %v1504_v23  ;;  %v416_v33 = vmin.f32 %v1501_v22, %v1505_v45  ;;  %v3169_v5 = vld [vmem:[#allocation38_spill] sm:$0xff] }
  0x62   :  { %3157 = vst [vmem:[#allocation15_spill] sm:$0xff] %v2295_v38  ;;  %v417_v25 = vmin.f32 %v1502_v13, %v1506_v58  ;;  %v418_v20 = vmin.f32 %v1503_v4, %v1507_v17 }
  0x63   :  { %3158 = vst [vmem:[#allocation17_spill] sm:$0xff] %v2297_v26  ;;  %v419_v35 = vadd.f32 %v1496_v32, %v415_v54  ;;  %v420_v44 = vadd.f32 %v1497_v1, %v416_v33  ;;  %v427_v3 = vsub.f32 %v415_v54, %v1496_v32  ;;  %v428_v31 = vsub.f32 %v416_v33, %v1497_v1  ;;  %v3168_v32 = vld [vmem:[#allocation37_spill] sm:$0xff] }
  0x64   :  { %v421_v52 = vadd.f32 %v1498_v30, %v417_v25  ;;  %v422_v37 = vadd.f32 %v1499_v62, %v418_v20  ;;  %v429_v8 = vsub.f32 %v417_v25, %v1498_v30  ;;  %v430_v50 = vsub.f32 %v418_v20, %v1499_v62 }
  0x65   :  { %v2307_v59 = vmul.f32 0.5, %v419_v35  ;;  %v2309_v14 = vmul.f32 0.5, %v420_v44  ;;  %v2311_v56 = vmul.f32 0.25, %v427_v3  ;;  %v2313_v34 = vmul.f32 0.25, %v428_v31 }
  0x66   :  { %v2315_v53 = vmul.f32 0.5, %v421_v52  ;;  %v2317_v48 = vmul.f32 0.5, %v422_v37  ;;  %v2319_v57 = vmul.f32 0.25, %v429_v8  ;;  %v2321_v63 = vmul.f32 0.25, %v430_v50 }
  0x67   :  { %v435_v29 = vsub.f32 %v1971_v39, %v2307_v59  ;;  %v436_v11 = vsub.f32 %v1973_v40, %v2309_v14  ;;  %v439_v36 = vsub.f32 %v1989_v55, %v2307_v59  ;;  %v440_v42 = vsub.f32 %v1993_v61, %v2309_v14 }
  0x68   :  { %v437_v47 = vsub.f32 %v1975_v41, %v2315_v53  ;;  %v438_v49 = vsub.f32 %v3159_v27, %v2317_v48  ;;  %v441_v15 = vsub.f32 %v3160_v9, %v2315_v53  ;;  %v442_v46 = vsub.f32 %v3161_v18, %v2317_v48 }
  0x69   :  { %v443_v10 = vsub.f32 %v3162_v6, %v2307_v59  ;;  %v444_v7 = vsub.f32 %v3163_v43, %v2309_v14  ;;  %v445_v24 = vsub.f32 %v3164_v51, %v2315_v53  ;;  %v446_v21 = vsub.f32 %v3165_v0, %v2317_v48 }
  0x6a   :  { %v447_v2 = vsub.f32 %v3166_v28, %v2307_v59  ;;  %v448_v19 = vsub.f32 %v3167_v60, %v2309_v14  ;;  %v449_v1 = vsub.f32 %v3168_v32, %v2315_v53  ;;  %v450_v22 = vsub.f32 %v3169_v5, %v2317_v48 }
  0x6b   :  { %v451_v13 = vmul.f32 %v439_v36, %v435_v29  ;;  %v452_v4 = vmul.f32 %v440_v42, %v436_v11  ;;  %v453_v23 = vmul.f32 %v441_v15, %v437_v47  ;;  %v454_v45 = vmul.f32 %v442_v46, %v438_v49 }
  0x6c   :  { %v455_v30 = vmul.f32 %v447_v2, %v443_v10  ;;  %v456_v62 = vmul.f32 %v448_v19, %v444_v7  ;;  %v457_v58 = vmul.f32 %v449_v1, %v445_v24  ;;  %v458_v17 = vmul.f32 %v450_v22, %v446_v21 }
  0x6d   :  { %v459_v54 = vadd.f32 %v439_v36, %v435_v29  ;;  %v460_v33 = vadd.f32 %v440_v42, %v436_v11  ;;  %v461_v25 = vadd.f32 %v441_v15, %v437_v47  ;;  %v462_v20 = vadd.f32 %v442_v46, %v438_v49 }
  0x6e   :  { %v467_v35 = vadd.f32 %v447_v2, %v443_v10  ;;  %v468_v44 = vadd.f32 %v448_v19, %v444_v7  ;;  %v469_v3 = vadd.f32 %v449_v1, %v445_v24  ;;  %v470_v31 = vadd.f32 %v450_v22, %v446_v21 }
  0x6f   :  { %v463_v52 = vmul.f32 %v459_v54, %v455_v30  ;;  %v464_v37 = vmul.f32 %v460_v33, %v456_v62  ;;  %v465_v8 = vmul.f32 %v461_v25, %v457_v58  ;;  %v466_v50 = vmul.f32 %v462_v20, %v458_v17  ;;  %v3172_v54 = vld [vmem:[#allocation37_spill] sm:$0xff]  ;;  %v3173_v25 = vld [vmem:[#allocation38_spill] sm:$0xff] }
  0x70   :  { %v471_v26 = vmul.f32 %v467_v35, %v451_v13  ;;  %v472_v38 = vmul.f32 %v468_v44, %v452_v4  ;;  %v473_v12 = vmul.f32 %v469_v3, %v453_v23  ;;  %v474_v16 = vmul.f32 %v470_v31, %v454_v45 }
  0x71   :  { %v483_v5 = vmul.f32 %v455_v30, %v451_v13  ;;  %v484_v32 = vmul.f32 %v456_v62, %v452_v4  ;;  %v485_v60 = vmul.f32 %v457_v58, %v453_v23  ;;  %v486_v28 = vmul.f32 %v458_v17, %v454_v45  ;;  %v3170_v30 = vld [vmem:[#allocation35_spill] sm:$0xff]  ;;  %v3171_v58 = vld [vmem:[#allocation36_spill] sm:$0xff] }
  0x72   :  { %v475_v29 = vadd.f32 %v471_v26, %v463_v52  ;;  %v476_v11 = vadd.f32 %v472_v38, %v464_v37  ;;  %v477_v36 = vadd.f32 %v473_v12, %v465_v8  ;;  %v478_v42 = vadd.f32 %v474_v16, %v466_v50 }
  0x73   :  { %v491_v47 = vsub.f32 0.0, %v2311_v56  ;;  %v492_v49 = vsub.f32 0.0, %v2313_v34  ;;  %v493_v15 = vsub.f32 0.0, %v2319_v57  ;;  %v494_v46 = vsub.f32 0.0, %v2321_v63 }
  0x74   :  { %v479_v10 = vmul.f32 0.5, %v475_v29  ;;  %v480_v7 = vmul.f32 0.5, %v476_v11  ;;  %v481_v24 = vmul.f32 0.5, %v477_v36  ;;  %v482_v21 = vmul.f32 0.5, %v478_v42 }
  0x76   :  { %vm487_vm15 = vcmp.lt.f32.partialorder %v479_v10, %v483_v5  ;;  %vm488_vm0 = vcmp.lt.f32.partialorder %v480_v7, %v484_v32  ;;  %vm489_vm1 = vcmp.lt.f32.partialorder %v481_v24, %v485_v60  ;;  %vm490_vm2 = vcmp.lt.f32.partialorder %v482_v21, %v486_v28 }
  0x77   :  { %v495_v38 = vsel %vm487_vm15, %v2311_v56, %v491_v47  ;;  %v496_v16 = vsel %vm488_vm0, %v2313_v34, %v492_v49  ;;  %v497_v12 = vsel %vm489_vm1, %v2319_v57, %v493_v15  ;;  %v498_v26 = vsel %vm490_vm2, %v2321_v63, %v494_v46 }
  0x78   :  { %v2364_v2 = vadd.f32 %v495_v38, %v2307_v59  ;;  %v2367_v19 = vadd.f32 %v496_v16, %v2309_v14  ;;  %v2370_v1 = vadd.f32 %v497_v12, %v2315_v53  ;;  %v2373_v60 = vadd.f32 %v498_v26, %v2317_v48 }
  0x79   :  { %v2376_v28 = vmul.f32 0.5, %v2311_v56  ;;  %v2379_v32 = vmul.f32 0.5, %v2313_v34  ;;  %v2382_v5 = vmul.f32 0.5, %v2319_v57  ;;  %v2385_v59 = vmul.f32 0.5, %v2321_v63 }
  0x7a   :  { %v507_v14 = vsub.f32 %v1971_v39, %v2364_v2  ;;  %v508_v53 = vsub.f32 %v1973_v40, %v2367_v19  ;;  %v509_v48 = vsub.f32 %v1975_v41, %v2370_v1  ;;  %v510_v56 = vsub.f32 %v3159_v27, %v2373_v60 }
  0x7b   :  { %v511_v34 = vsub.f32 %v1989_v55, %v2364_v2  ;;  %v512_v57 = vsub.f32 %v1993_v61, %v2367_v19  ;;  %v513_v63 = vsub.f32 %v3160_v9, %v2370_v1  ;;  %v514_v22 = vsub.f32 %v3161_v18, %v2373_v60 }
  0x7c   :  { %v515_v13 = vsub.f32 %v3162_v6, %v2364_v2  ;;  %v516_v4 = vsub.f32 %v3163_v43, %v2367_v19  ;;  %v517_v23 = vsub.f32 %v3164_v51, %v2370_v1  ;;  %v518_v45 = vsub.f32 %v3165_v0, %v2373_v60 }
  0x7d   :  { %v519_v62 = vsub.f32 %v3170_v30, %v2364_v2  ;;  %v520_v17 = vsub.f32 %v3171_v58, %v2367_v19  ;;  %v521_v33 = vsub.f32 %v3172_v54, %v2370_v1  ;;  %v522_v20 = vsub.f32 %v3173_v25, %v2373_v60 }
  0x7e   :  { %v523_v35 = vmul.f32 %v511_v34, %v507_v14  ;;  %v524_v44 = vmul.f32 %v512_v57, %v508_v53  ;;  %v525_v3 = vmul.f32 %v513_v63, %v509_v48  ;;  %v526_v31 = vmul.f32 %v514_v22, %v510_v56 }
  0x7f   :  { %v527_v52 = vmul.f32 %v519_v62, %v515_v13  ;;  %v528_v37 = vmul.f32 %v520_v17, %v516_v4  ;;  %v529_v8 = vmul.f32 %v521_v33, %v517_v23  ;;  %v530_v50 = vmul.f32 %v522_v20, %v518_v45 }
  0x80   :  { %v531_v29 = vadd.f32 %v511_v34, %v507_v14  ;;  %v532_v11 = vadd.f32 %v512_v57, %v508_v53  ;;  %v533_v36 = vadd.f32 %v513_v63, %v509_v48  ;;  %v534_v42 = vadd.f32 %v514_v22, %v510_v56 }
  0x81   :  { %v539_v47 = vadd.f32 %v519_v62, %v515_v13  ;;  %v540_v49 = vadd.f32 %v520_v17, %v516_v4  ;;  %v541_v15 = vadd.f32 %v521_v33, %v517_v23  ;;  %v542_v46 = vadd.f32 %v522_v20, %v518_v45 }
  0x82   :  { %v535_v10 = vmul.f32 %v531_v29, %v527_v52  ;;  %v536_v7 = vmul.f32 %v532_v11, %v528_v37  ;;  %v537_v24 = vmul.f32 %v533_v36, %v529_v8  ;;  %v538_v21 = vmul.f32 %v534_v42, %v530_v50  ;;  %v3174_v29 = vld [vmem:[#allocation35_spill] sm:$0xff]  ;;  %v3175_v36 = vld [vmem:[#allocation36_spill] sm:$0xff] }
  0x83   :  { %v543_v38 = vmul.f32 %v539_v47, %v523_v35  ;;  %v544_v16 = vmul.f32 %v540_v49, %v524_v44  ;;  %v545_v12 = vmul.f32 %v541_v15, %v525_v3  ;;  %v546_v26 = vmul.f32 %v542_v46, %v526_v31  ;;  %v3176_v47 = vld [vmem:[#allocation37_spill] sm:$0xff]  ;;  %v3177_v15 = vld [vmem:[#allocation38_spill] sm:$0xff] }
  0x84   :  { %v555_v25 = vmul.f32 %v527_v52, %v523_v35  ;;  %v556_v54 = vmul.f32 %v528_v37, %v524_v44  ;;  %v557_v58 = vmul.f32 %v529_v8, %v525_v3  ;;  %v558_v30 = vmul.f32 %v530_v50, %v526_v31 }
  0x85   :  { %v547_v14 = vadd.f32 %v543_v38, %v535_v10  ;;  %v548_v53 = vadd.f32 %v544_v16, %v536_v7  ;;  %v549_v48 = vadd.f32 %v545_v12, %v537_v24  ;;  %v550_v56 = vadd.f32 %v546_v26, %v538_v21 }
  0x86   :  { %v563_v34 = vsub.f32 0.0, %v2376_v28  ;;  %v564_v57 = vsub.f32 0.0, %v2379_v32  ;;  %v565_v63 = vsub.f32 0.0, %v2382_v5  ;;  %v566_v22 = vsub.f32 0.0, %v2385_v59 }
  0x87   :  { %v551_v13 = vmul.f32 0.5, %v547_v14  ;;  %v552_v4 = vmul.f32 0.5, %v548_v53  ;;  %v553_v23 = vmul.f32 0.5, %v549_v48  ;;  %v554_v45 = vmul.f32 0.5, %v550_v56 }
  0x89   :  { %vm559_vm3 = vcmp.lt.f32.partialorder %v551_v13, %v555_v25  ;;  %vm560_vm4 = vcmp.lt.f32.partialorder %v552_v4, %v556_v54  ;;  %vm561_vm5 = vcmp.lt.f32.partialorder %v553_v23, %v557_v58  ;;  %vm562_vm6 = vcmp.lt.f32.partialorder %v554_v45, %v558_v30 }
  0x8a   :  { %v567_v62 = vsel %vm559_vm3, %v2376_v28, %v563_v34  ;;  %v568_v17 = vsel %vm560_vm4, %v2379_v32, %v564_v57  ;;  %v569_v33 = vsel %vm561_vm5, %v2382_v5, %v565_v63  ;;  %v570_v20 = vsel %vm562_vm6, %v2385_v59, %v566_v22 }
  0x8b   :  { %v2428_v35 = vadd.f32 %v567_v62, %v2364_v2  ;;  %v2431_v44 = vadd.f32 %v568_v17, %v2367_v19  ;;  %v2434_v3 = vadd.f32 %v569_v33, %v2370_v1  ;;  %v2437_v58 = vadd.f32 %v570_v20, %v2373_v60 }
  0x8c   :  { %v2440_v30 = vmul.f32 0.5, %v2376_v28  ;;  %v2443_v54 = vmul.f32 0.5, %v2379_v32  ;;  %v2446_v25 = vmul.f32 0.5, %v2382_v5  ;;  %v2449_v2 = vmul.f32 0.5, %v2385_v59 }
  0x8d   :  { %v579_v19 = vsub.f32 %v1971_v39, %v2428_v35  ;;  %v580_v1 = vsub.f32 %v1973_v40, %v2431_v44  ;;  %v581_v60 = vsub.f32 %v1975_v41, %v2434_v3  ;;  %v582_v28 = vsub.f32 %v3159_v27, %v2437_v58 }
  0x8e   :  { %v583_v32 = vsub.f32 %v1989_v55, %v2428_v35  ;;  %v584_v5 = vsub.f32 %v1993_v61, %v2431_v44  ;;  %v585_v59 = vsub.f32 %v3160_v9, %v2434_v3  ;;  %v586_v31 = vsub.f32 %v3161_v18, %v2437_v58 }
  0x8f   :  { %v587_v52 = vsub.f32 %v3162_v6, %v2428_v35  ;;  %v588_v37 = vsub.f32 %v3163_v43, %v2431_v44  ;;  %v589_v8 = vsub.f32 %v3164_v51, %v2434_v3  ;;  %v590_v50 = vsub.f32 %v3165_v0, %v2437_v58 }
  0x90   :  { %v591_v11 = vsub.f32 %v3174_v29, %v2428_v35  ;;  %v592_v42 = vsub.f32 %v3175_v36, %v2431_v44  ;;  %v593_v49 = vsub.f32 %v3176_v47, %v2434_v3  ;;  %v594_v46 = vsub.f32 %v3177_v15, %v2437_v58 }
  0x91   :  { %v595_v10 = vmul.f32 %v583_v32, %v579_v19  ;;  %v596_v7 = vmul.f32 %v584_v5, %v580_v1  ;;  %v597_v24 = vmul.f32 %v585_v59, %v581_v60  ;;  %v598_v21 = vmul.f32 %v586_v31, %v582_v28 }
  0x92   :  { %v599_v38 = vmul.f32 %v591_v11, %v587_v52  ;;  %v600_v16 = vmul.f32 %v592_v42, %v588_v37  ;;  %v601_v12 = vmul.f32 %v593_v49, %v589_v8  ;;  %v602_v26 = vmul.f32 %v594_v46, %v590_v50 }
  0x93   :  { %v603_v14 = vadd.f32 %v583_v32, %v579_v19  ;;  %v604_v53 = vadd.f32 %v584_v5, %v580_v1  ;;  %v605_v48 = vadd.f32 %v585_v59, %v581_v60  ;;  %v606_v56 = vadd.f32 %v586_v31, %v582_v28 }
  0x94   :  { %v611_v34 = vadd.f32 %v591_v11, %v587_v52  ;;  %v612_v57 = vadd.f32 %v592_v42, %v588_v37  ;;  %v613_v63 = vadd.f32 %v593_v49, %v589_v8  ;;  %v614_v22 = vadd.f32 %v594_v46, %v590_v50 }
  0x95   :  { %v607_v13 = vmul.f32 %v603_v14, %v599_v38  ;;  %v608_v4 = vmul.f32 %v604_v53, %v600_v16  ;;  %v609_v23 = vmul.f32 %v605_v48, %v601_v12  ;;  %v610_v45 = vmul.f32 %v606_v56, %v602_v26  ;;  %v3178_v14 = vld [vmem:[#allocation35_spill] sm:$0xff]  ;;  %v3179_v48 = vld [vmem:[#allocation36_spill] sm:$0xff] }
  0x96   :  { %v615_v62 = vmul.f32 %v611_v34, %v595_v10  ;;  %v616_v17 = vmul.f32 %v612_v57, %v596_v7  ;;  %v617_v33 = vmul.f32 %v613_v63, %v597_v24  ;;  %v618_v20 = vmul.f32 %v614_v22, %v598_v21  ;;  %v3180_v34 = vld [vmem:[#allocation37_spill] sm:$0xff]  ;;  %v3181_v63 = vld [vmem:[#allocation38_spill] sm:$0xff] }
  0x97   :  { %v627_v15 = vmul.f32 %v599_v38, %v595_v10  ;;  %v628_v47 = vmul.f32 %v600_v16, %v596_v7  ;;  %v629_v36 = vmul.f32 %v601_v12, %v597_v24  ;;  %v630_v29 = vmul.f32 %v602_v26, %v598_v21 }
  0x98   :  { %v619_v19 = vadd.f32 %v615_v62, %v607_v13  ;;  %v620_v1 = vadd.f32 %v616_v17, %v608_v4  ;;  %v621_v60 = vadd.f32 %v617_v33, %v609_v23  ;;  %v622_v28 = vadd.f32 %v618_v20, %v610_v45 }
  0x99   :  { %v635_v32 = vsub.f32 0.0, %v2440_v30  ;;  %v636_v5 = vsub.f32 0.0, %v2443_v54  ;;  %v637_v59 = vsub.f32 0.0, %v2446_v25  ;;  %v638_v31 = vsub.f32 0.0, %v2449_v2 }
  0x9a   :  { %v623_v52 = vmul.f32 0.5, %v619_v19  ;;  %v624_v37 = vmul.f32 0.5, %v620_v1  ;;  %v625_v8 = vmul.f32 0.5, %v621_v60  ;;  %v626_v50 = vmul.f32 0.5, %v622_v28 }
  0x9c   :  { %vm631_vm7 = vcmp.lt.f32.partialorder %v623_v52, %v627_v15  ;;  %vm632_vm8 = vcmp.lt.f32.partialorder %v624_v37, %v628_v47  ;;  %vm633_vm9 = vcmp.lt.f32.partialorder %v625_v8, %v629_v36  ;;  %vm634_vm10 = vcmp.lt.f32.partialorder %v626_v50, %v630_v29 }
  0x9d   :  { %v639_v11 = vsel %vm631_vm7, %v2440_v30, %v635_v32  ;;  %v640_v42 = vsel %vm632_vm8, %v2443_v54, %v636_v5  ;;  %v641_v49 = vsel %vm633_vm9, %v2446_v25, %v637_v59  ;;  %v642_v46 = vsel %vm634_vm10, %v2449_v2, %v638_v31 }
  0x9e   :  { %v2492_v10 = vadd.f32 %v639_v11, %v2428_v35  ;;  %v2495_v7 = vadd.f32 %v640_v42, %v2431_v44  ;;  %v2498_v24 = vadd.f32 %v641_v49, %v2434_v3  ;;  %v2501_v36 = vadd.f32 %v642_v46, %v2437_v58 }
  0x9f   :  { %v2504_v29 = vmul.f32 0.5, %v2440_v30  ;;  %v2507_v47 = vmul.f32 0.5, %v2443_v54  ;;  %v2510_v15 = vmul.f32 0.5, %v2446_v25  ;;  %v2513_v35 = vmul.f32 0.5, %v2449_v2 }
  0xa0   :  { %v651_v44 = vsub.f32 %v1971_v39, %v2492_v10  ;;  %v652_v3 = vsub.f32 %v1973_v40, %v2495_v7  ;;  %v653_v58 = vsub.f32 %v1975_v41, %v2498_v24  ;;  %v654_v30 = vsub.f32 %v3159_v27, %v2501_v36 }
  0xa1   :  { %v655_v54 = vsub.f32 %v1989_v55, %v2492_v10  ;;  %v656_v25 = vsub.f32 %v1993_v61, %v2495_v7  ;;  %v657_v2 = vsub.f32 %v3160_v9, %v2498_v24  ;;  %v658_v21 = vsub.f32 %v3161_v18, %v2501_v36 }
  0xa2   :  { %v659_v38 = vsub.f32 %v3162_v6, %v2492_v10  ;;  %v660_v16 = vsub.f32 %v3163_v43, %v2495_v7  ;;  %v661_v12 = vsub.f32 %v3164_v51, %v2498_v24  ;;  %v662_v26 = vsub.f32 %v3165_v0, %v2501_v36 }
  0xa3   :  { %v663_v53 = vsub.f32 %v3178_v14, %v2492_v10  ;;  %v664_v56 = vsub.f32 %v3179_v48, %v2495_v7  ;;  %v665_v57 = vsub.f32 %v3180_v34, %v2498_v24  ;;  %v666_v22 = vsub.f32 %v3181_v63, %v2501_v36 }
  0xa4   :  { %v667_v13 = vmul.f32 %v655_v54, %v651_v44  ;;  %v668_v4 = vmul.f32 %v656_v25, %v652_v3  ;;  %v669_v23 = vmul.f32 %v657_v2, %v653_v58  ;;  %v670_v45 = vmul.f32 %v658_v21, %v654_v30 }
  0xa5   :  { %v671_v62 = vmul.f32 %v663_v53, %v659_v38  ;;  %v672_v17 = vmul.f32 %v664_v56, %v660_v16  ;;  %v673_v33 = vmul.f32 %v665_v57, %v661_v12  ;;  %v674_v20 = vmul.f32 %v666_v22, %v662_v26 }
  0xa6   :  { %v675_v19 = vadd.f32 %v655_v54, %v651_v44  ;;  %v676_v1 = vadd.f32 %v656_v25, %v652_v3  ;;  %v677_v60 = vadd.f32 %v657_v2, %v653_v58  ;;  %v678_v28 = vadd.f32 %v658_v21, %v654_v30 }
  0xa7   :  { %v683_v32 = vadd.f32 %v663_v53, %v659_v38  ;;  %v684_v5 = vadd.f32 %v664_v56, %v660_v16  ;;  %v685_v59 = vadd.f32 %v665_v57, %v661_v12  ;;  %v686_v31 = vadd.f32 %v666_v22, %v662_v26 }
  0xa8   :  { %v679_v52 = vmul.f32 %v675_v19, %v671_v62  ;;  %v680_v37 = vmul.f32 %v676_v1, %v672_v17  ;;  %v681_v8 = vmul.f32 %v677_v60, %v673_v33  ;;  %v682_v50 = vmul.f32 %v678_v28, %v674_v20  ;;  %v3182_v19 = vld [vmem:[#allocation35_spill] sm:$0xff]  ;;  %v3183_v60 = vld [vmem:[#allocation36_spill] sm:$0xff] }
  0xa9   :  { %v687_v11 = vmul.f32 %v683_v32, %v667_v13  ;;  %v688_v42 = vmul.f32 %v684_v5, %v668_v4  ;;  %v689_v49 = vmul.f32 %v685_v59, %v669_v23  ;;  %v690_v46 = vmul.f32 %v686_v31, %v670_v45  ;;  %v3184_v32 = vld [vmem:[#allocation37_spill] sm:$0xff]  ;;  %v3185_v59 = vld [vmem:[#allocation38_spill] sm:$0xff] }
  0xaa   :  { %v699_v63 = vmul.f32 %v671_v62, %v667_v13  ;;  %v700_v34 = vmul.f32 %v672_v17, %v668_v4  ;;  %v701_v48 = vmul.f32 %v673_v33, %v669_v23  ;;  %v702_v14 = vmul.f32 %v674_v20, %v670_v45 }
  0xab   :  { %v691_v44 = vadd.f32 %v687_v11, %v679_v52  ;;  %v692_v3 = vadd.f32 %v688_v42, %v680_v37  ;;  %v693_v58 = vadd.f32 %v689_v49, %v681_v8  ;;  %v694_v30 = vadd.f32 %v690_v46, %v682_v50 }
  0xac   :  { %v707_v54 = vsub.f32 0.0, %v2504_v29  ;;  %v708_v25 = vsub.f32 0.0, %v2507_v47  ;;  %v709_v2 = vsub.f32 0.0, %v2510_v15  ;;  %v710_v21 = vsub.f32 0.0, %v2513_v35 }
  0xad   :  { %v695_v38 = vmul.f32 0.5, %v691_v44  ;;  %v696_v16 = vmul.f32 0.5, %v692_v3  ;;  %v697_v12 = vmul.f32 0.5, %v693_v58  ;;  %v698_v26 = vmul.f32 0.5, %v694_v30 }
  0xaf   :  { %vm703_vm11 = vcmp.lt.f32.partialorder %v695_v38, %v699_v63  ;;  %vm704_vm12 = vcmp.lt.f32.partialorder %v696_v16, %v700_v34  ;;  %vm705_vm13 = vcmp.lt.f32.partialorder %v697_v12, %v701_v48  ;;  %vm706_vm14 = vcmp.lt.f32.partialorder %v698_v26, %v702_v14 }
  0xb0   :  { %v711_v53 = vsel %vm703_vm11, %v2504_v29, %v707_v54  ;;  %v712_v56 = vsel %vm704_vm12, %v2507_v47, %v708_v25  ;;  %v713_v57 = vsel %vm705_vm13, %v2510_v15, %v709_v2  ;;  %v714_v22 = vsel %vm706_vm14, %v2513_v35, %v710_v21 }
  0xb1   :  { %v2556_v13 = vadd.f32 %v711_v53, %v2492_v10  ;;  %v2559_v4 = vadd.f32 %v712_v56, %v2495_v7  ;;  %v2562_v23 = vadd.f32 %v713_v57, %v2498_v24  ;;  %v2565_v48 = vadd.f32 %v714_v22, %v2501_v36 }
  0xb2   :  { %v2568_v14 = vmul.f32 0.5, %v2504_v29  ;;  %v2571_v34 = vmul.f32 0.5, %v2507_v47  ;;  %v2574_v63 = vmul.f32 0.5, %v2510_v15  ;;  %v2577_v10 = vmul.f32 0.5, %v2513_v35 }
  0xb3   :  { %v723_v7 = vsub.f32 %v1971_v39, %v2556_v13  ;;  %v724_v24 = vsub.f32 %v1973_v40, %v2559_v4  ;;  %v725_v36 = vsub.f32 %v1975_v41, %v2562_v23  ;;  %v726_v29 = vsub.f32 %v3159_v27, %v2565_v48 }
  0xb4   :  { %v727_v47 = vsub.f32 %v1989_v55, %v2556_v13  ;;  %v728_v15 = vsub.f32 %v1993_v61, %v2559_v4  ;;  %v729_v35 = vsub.f32 %v3160_v9, %v2562_v23  ;;  %v730_v45 = vsub.f32 %v3161_v18, %v2565_v48 }
  0xb5   :  { %v731_v62 = vsub.f32 %v3162_v6, %v2556_v13  ;;  %v732_v17 = vsub.f32 %v3163_v43, %v2559_v4  ;;  %v733_v33 = vsub.f32 %v3164_v51, %v2562_v23  ;;  %v734_v20 = vsub.f32 %v3165_v0, %v2565_v48 }
  0xb6   :  { %v735_v1 = vsub.f32 %v3182_v19, %v2556_v13  ;;  %v736_v28 = vsub.f32 %v3183_v60, %v2559_v4  ;;  %v737_v5 = vsub.f32 %v3184_v32, %v2562_v23  ;;  %v738_v31 = vsub.f32 %v3185_v59, %v2565_v48 }
  0xb7   :  { %v739_v52 = vmul.f32 %v727_v47, %v723_v7  ;;  %v740_v37 = vmul.f32 %v728_v15, %v724_v24  ;;  %v741_v8 = vmul.f32 %v729_v35, %v725_v36  ;;  %v742_v50 = vmul.f32 %v730_v45, %v726_v29 }
  0xb8   :  { %v743_v11 = vmul.f32 %v735_v1, %v731_v62  ;;  %v744_v42 = vmul.f32 %v736_v28, %v732_v17  ;;  %v745_v49 = vmul.f32 %v737_v5, %v733_v33  ;;  %v746_v46 = vmul.f32 %v738_v31, %v734_v20 }
  0xb9   :  { %v747_v44 = vadd.f32 %v727_v47, %v723_v7  ;;  %v748_v3 = vadd.f32 %v728_v15, %v724_v24  ;;  %v749_v58 = vadd.f32 %v729_v35, %v725_v36  ;;  %v750_v30 = vadd.f32 %v730_v45, %v726_v29 }
  0xba   :  { %v755_v54 = vadd.f32 %v735_v1, %v731_v62  ;;  %v756_v25 = vadd.f32 %v736_v28, %v732_v17  ;;  %v757_v2 = vadd.f32 %v737_v5, %v733_v33  ;;  %v758_v21 = vadd.f32 %v738_v31, %v734_v20 }
  0xbb   :  { %v751_v38 = vmul.f32 %v747_v44, %v743_v11  ;;  %v752_v16 = vmul.f32 %v748_v3, %v744_v42  ;;  %v753_v12 = vmul.f32 %v749_v58, %v745_v49  ;;  %v754_v26 = vmul.f32 %v750_v30, %v746_v46  ;;  %v3186_v44 = vld [vmem:[#allocation35_spill] sm:$0xff]  ;;  %v3187_v58 = vld [vmem:[#allocation36_spill] sm:$0xff] }
  0xbc   :  { %v759_v53 = vmul.f32 %v755_v54, %v739_v52  ;;  %v760_v56 = vmul.f32 %v756_v25, %v740_v37  ;;  %v761_v57 = vmul.f32 %v757_v2, %v741_v8  ;;  %v762_v22 = vmul.f32 %v758_v21, %v742_v50  ;;  %v3188_v54 = vld [vmem:[#allocation37_spill] sm:$0xff]  ;;  %v3189_v2 = vld [vmem:[#allocation38_spill] sm:$0xff] }
  0xbd   :  { %v771_v59 = vmul.f32 %v743_v11, %v739_v52  ;;  %v772_v32 = vmul.f32 %v744_v42, %v740_v37  ;;  %v773_v60 = vmul.f32 %v745_v49, %v741_v8  ;;  %v774_v19 = vmul.f32 %v746_v46, %v742_v50 }
  0xbe   :  { %v763_v7 = vadd.f32 %v759_v53, %v751_v38  ;;  %v764_v24 = vadd.f32 %v760_v56, %v752_v16  ;;  %v765_v36 = vadd.f32 %v761_v57, %v753_v12  ;;  %v766_v29 = vadd.f32 %v762_v22, %v754_v26 }
  0xbf   :  { %v779_v47 = vsub.f32 0.0, %v2568_v14  ;;  %v780_v15 = vsub.f32 0.0, %v2571_v34  ;;  %v781_v35 = vsub.f32 0.0, %v2574_v63  ;;  %v782_v45 = vsub.f32 0.0, %v2577_v10 }
  0xc0   :  { %v767_v62 = vmul.f32 0.5, %v763_v7  ;;  %v768_v17 = vmul.f32 0.5, %v764_v24  ;;  %v769_v33 = vmul.f32 0.5, %v765_v36  ;;  %v770_v20 = vmul.f32 0.5, %v766_v29 }
  0xc2   :  { %vm775_vm15 = vcmp.lt.f32.partialorder %v767_v62, %v771_v59  ;;  %vm776_vm0 = vcmp.lt.f32.partialorder %v768_v17, %v772_v32  ;;  %vm777_vm1 = vcmp.lt.f32.partialorder %v769_v33, %v773_v60  ;;  %vm778_vm2 = vcmp.lt.f32.partialorder %v770_v20, %v774_v19 }
  0xc3   :  { %v783_v1 = vsel %vm775_vm15, %v2568_v14, %v779_v47  ;;  %v784_v28 = vsel %vm776_vm0, %v2571_v34, %v780_v15  ;;  %v785_v5 = vsel %vm777_vm1, %v2574_v63, %v781_v35  ;;  %v786_v31 = vsel %vm778_vm2, %v2577_v10, %v782_v45 }
  0xc4   :  { %v2620_v52 = vadd.f32 %v783_v1, %v2556_v13  ;;  %v2623_v37 = vadd.f32 %v784_v28, %v2559_v4  ;;  %v2626_v8 = vadd.f32 %v785_v5, %v2562_v23  ;;  %v2629_v60 = vadd.f32 %v786_v31, %v2565_v48 }
  0xc5   :  { %v2632_v19 = vmul.f32 0.5, %v2568_v14  ;;  %v2635_v32 = vmul.f32 0.5, %v2571_v34  ;;  %v2638_v59 = vmul.f32 0.5, %v2574_v63  ;;  %v2641_v13 = vmul.f32 0.5, %v2577_v10 }
  0xc6   :  { %v795_v4 = vsub.f32 %v1971_v39, %v2620_v52  ;;  %v796_v23 = vsub.f32 %v1973_v40, %v2623_v37  ;;  %v797_v48 = vsub.f32 %v1975_v41, %v2626_v8  ;;  %v798_v14 = vsub.f32 %v3159_v27, %v2629_v60 }
  0xc7   :  { %v799_v34 = vsub.f32 %v1989_v55, %v2620_v52  ;;  %v800_v63 = vsub.f32 %v1993_v61, %v2623_v37  ;;  %v801_v10 = vsub.f32 %v3160_v9, %v2626_v8  ;;  %v802_v50 = vsub.f32 %v3161_v18, %v2629_v60 }
  0xc8   :  { %v803_v11 = vsub.f32 %v3162_v6, %v2620_v52  ;;  %v804_v42 = vsub.f32 %v3163_v43, %v2623_v37  ;;  %v805_v49 = vsub.f32 %v3164_v51, %v2626_v8  ;;  %v806_v46 = vsub.f32 %v3165_v0, %v2629_v60 }
  0xc9   :  { %v807_v3 = vsub.f32 %v3186_v44, %v2620_v52  ;;  %v808_v30 = vsub.f32 %v3187_v58, %v2623_v37  ;;  %v809_v25 = vsub.f32 %v3188_v54, %v2626_v8  ;;  %v810_v21 = vsub.f32 %v3189_v2, %v2629_v60 }
  0xca   :  { %v811_v38 = vmul.f32 %v799_v34, %v795_v4  ;;  %v812_v16 = vmul.f32 %v800_v63, %v796_v23  ;;  %v813_v12 = vmul.f32 %v801_v10, %v797_v48  ;;  %v814_v26 = vmul.f32 %v802_v50, %v798_v14 }
  0xcb   :  { %v815_v53 = vmul.f32 %v807_v3, %v803_v11  ;;  %v816_v56 = vmul.f32 %v808_v30, %v804_v42  ;;  %v817_v57 = vmul.f32 %v809_v25, %v805_v49  ;;  %v818_v22 = vmul.f32 %v810_v21, %v806_v46 }
  0xcc   :  { %v819_v7 = vadd.f32 %v799_v34, %v795_v4  ;;  %v820_v24 = vadd.f32 %v800_v63, %v796_v23  ;;  %v821_v36 = vadd.f32 %v801_v10, %v797_v48  ;;  %v822_v29 = vadd.f32 %v802_v50, %v798_v14 }
  0xcd   :  { %v827_v47 = vadd.f32 %v807_v3, %v803_v11  ;;  %v828_v15 = vadd.f32 %v808_v30, %v804_v42  ;;  %v829_v35 = vadd.f32 %v809_v25, %v805_v49  ;;  %v830_v45 = vadd.f32 %v810_v21, %v806_v46 }
  0xce   :  { %v823_v62 = vmul.f32 %v819_v7, %v815_v53  ;;  %v824_v17 = vmul.f32 %v820_v24, %v816_v56  ;;  %v825_v33 = vmul.f32 %v821_v36, %v817_v57  ;;  %v826_v20 = vmul.f32 %v822_v29, %v818_v22  ;;  %v3190_v7 = vld [vmem:[#allocation35_spill] sm:$0xff]  ;;  %v3191_v36 = vld [vmem:[#allocation36_spill] sm:$0xff] }
  0xcf   :  { %v831_v1 = vmul.f32 %v827_v47, %v811_v38  ;;  %v832_v28 = vmul.f32 %v828_v15, %v812_v16  ;;  %v833_v5 = vmul.f32 %v829_v35, %v813_v12  ;;  %v834_v31 = vmul.f32 %v830_v45, %v814_v26  ;;  %v3192_v47 = vld [vmem:[#allocation37_spill] sm:$0xff]  ;;  %v3193_v35 = vld [vmem:[#allocation38_spill] sm:$0xff] }
  0xd0   :  { %v843_v2 = vmul.f32 %v815_v53, %v811_v38  ;;  %v844_v54 = vmul.f32 %v816_v56, %v812_v16  ;;  %v845_v58 = vmul.f32 %v817_v57, %v813_v12  ;;  %v846_v44 = vmul.f32 %v818_v22, %v814_v26 }
  0xd1   :  { %v835_v4 = vadd.f32 %v831_v1, %v823_v62  ;;  %v836_v23 = vadd.f32 %v832_v28, %v824_v17  ;;  %v837_v48 = vadd.f32 %v833_v5, %v825_v33  ;;  %v838_v14 = vadd.f32 %v834_v31, %v826_v20 }
  0xd2   :  { %v851_v34 = vsub.f32 0.0, %v2632_v19  ;;  %v852_v63 = vsub.f32 0.0, %v2635_v32  ;;  %v853_v10 = vsub.f32 0.0, %v2638_v59  ;;  %v854_v50 = vsub.f32 0.0, %v2641_v13 }
  0xd3   :  { %v839_v11 = vmul.f32 0.5, %v835_v4  ;;  %v840_v42 = vmul.f32 0.5, %v836_v23  ;;  %v841_v49 = vmul.f32 0.5, %v837_v48  ;;  %v842_v46 = vmul.f32 0.5, %v838_v14 }
  0xd5   :  { %vm847_vm3 = vcmp.lt.f32.partialorder %v839_v11, %v843_v2  ;;  %vm848_vm4 = vcmp.lt.f32.partialorder %v840_v42, %v844_v54  ;;  %vm849_vm5 = vcmp.lt.f32.partialorder %v841_v49, %v845_v58  ;;  %vm850_vm6 = vcmp.lt.f32.partialorder %v842_v46, %v846_v44 }
  0xd6   :  { %v855_v3 = vsel %vm847_vm3, %v2632_v19, %v851_v34  ;;  %v856_v30 = vsel %vm848_vm4, %v2635_v32, %v852_v63  ;;  %v857_v25 = vsel %vm849_vm5, %v2638_v59, %v853_v10  ;;  %v858_v21 = vsel %vm850_vm6, %v2641_v13, %v854_v50 }
  0xd7   :  { %v2684_v38 = vadd.f32 %v855_v3, %v2620_v52  ;;  %v2687_v16 = vadd.f32 %v856_v30, %v2623_v37  ;;  %v2690_v12 = vadd.f32 %v857_v25, %v2626_v8  ;;  %v2693_v58 = vadd.f32 %v858_v21, %v2629_v60 }
  0xd8   :  { %v2696_v44 = vmul.f32 0.5, %v2632_v19  ;;  %v2699_v54 = vmul.f32 0.5, %v2635_v32  ;;  %v2702_v2 = vmul.f32 0.5, %v2638_v59  ;;  %v2705_v52 = vmul.f32 0.5, %v2641_v13 }
  0xd9   :  { %v867_v37 = vsub.f32 %v1971_v39, %v2684_v38  ;;  %v868_v8 = vsub.f32 %v1973_v40, %v2687_v16  ;;  %v869_v60 = vsub.f32 %v1975_v41, %v2690_v12  ;;  %v870_v19 = vsub.f32 %v3159_v27, %v2693_v58 }
  0xda   :  { %v871_v32 = vsub.f32 %v1989_v55, %v2684_v38  ;;  %v872_v59 = vsub.f32 %v1993_v61, %v2687_v16  ;;  %v873_v13 = vsub.f32 %v3160_v9, %v2690_v12  ;;  %v874_v26 = vsub.f32 %v3161_v18, %v2693_v58 }
  0xdb   :  { %v875_v53 = vsub.f32 %v3162_v6, %v2684_v38  ;;  %v876_v56 = vsub.f32 %v3163_v43, %v2687_v16  ;;  %v877_v57 = vsub.f32 %v3164_v51, %v2690_v12  ;;  %v878_v22 = vsub.f32 %v3165_v0, %v2693_v58 }
  0xdc   :  { %v879_v24 = vsub.f32 %v3190_v7, %v2684_v38  ;;  %v880_v29 = vsub.f32 %v3191_v36, %v2687_v16  ;;  %v881_v15 = vsub.f32 %v3192_v47, %v2690_v12  ;;  %v882_v45 = vsub.f32 %v3193_v35, %v2693_v58 }
  0xdd   :  { %v883_v62 = vmul.f32 %v871_v32, %v867_v37  ;;  %v884_v17 = vmul.f32 %v872_v59, %v868_v8  ;;  %v885_v33 = vmul.f32 %v873_v13, %v869_v60  ;;  %v886_v20 = vmul.f32 %v874_v26, %v870_v19 }
  0xde   :  { %v887_v1 = vmul.f32 %v879_v24, %v875_v53  ;;  %v888_v28 = vmul.f32 %v880_v29, %v876_v56  ;;  %v889_v5 = vmul.f32 %v881_v15, %v877_v57  ;;  %v890_v31 = vmul.f32 %v882_v45, %v878_v22 }
  0xdf   :  { %v891_v4 = vadd.f32 %v871_v32, %v867_v37  ;;  %v892_v23 = vadd.f32 %v872_v59, %v868_v8  ;;  %v893_v48 = vadd.f32 %v873_v13, %v869_v60  ;;  %v894_v14 = vadd.f32 %v874_v26, %v870_v19 }
  0xe0   :  { %v899_v34 = vadd.f32 %v879_v24, %v875_v53  ;;  %v900_v63 = vadd.f32 %v880_v29, %v876_v56  ;;  %v901_v10 = vadd.f32 %v881_v15, %v877_v57  ;;  %v902_v50 = vadd.f32 %v882_v45, %v878_v22 }
  0xe1   :  { %v895_v11 = vmul.f32 %v891_v4, %v887_v1  ;;  %v896_v42 = vmul.f32 %v892_v23, %v888_v28  ;;  %v897_v49 = vmul.f32 %v893_v48, %v889_v5  ;;  %v898_v46 = vmul.f32 %v894_v14, %v890_v31  ;;  %v3195_v48 = vld [vmem:[#allocation36_spill] sm:$0xff] }
  0xe2   :  { %v903_v3 = vmul.f32 %v899_v34, %v883_v62  ;;  %v904_v30 = vmul.f32 %v900_v63, %v884_v17  ;;  %v905_v25 = vmul.f32 %v901_v10, %v885_v33  ;;  %v906_v21 = vmul.f32 %v902_v50, %v886_v20  ;;  %v3196_v63 = vld [vmem:[#allocation37_spill] sm:$0xff] }
  0xe3   :  { %v915_v35 = vmul.f32 %v887_v1, %v883_v62  ;;  %v916_v47 = vmul.f32 %v888_v28, %v884_v17  ;;  %v917_v36 = vmul.f32 %v889_v5, %v885_v33  ;;  %v918_v7 = vmul.f32 %v890_v31, %v886_v20  ;;  %v3194_v31 = vld [vmem:[#allocation35_spill] sm:$0xff] }
  0xe4   :  { %v907_v37 = vadd.f32 %v903_v3, %v895_v11  ;;  %v908_v8 = vadd.f32 %v904_v30, %v896_v42  ;;  %v909_v60 = vadd.f32 %v905_v25, %v897_v49  ;;  %v910_v19 = vadd.f32 %v906_v21, %v898_v46  ;;  %v3197_v11 = vld [vmem:[#allocation38_spill] sm:$0xff] }
  0xe5   :  { %v923_v32 = vsub.f32 0.0, %v2696_v44  ;;  %v924_v59 = vsub.f32 0.0, %v2699_v54  ;;  %v925_v13 = vsub.f32 0.0, %v2702_v2  ;;  %v926_v26 = vsub.f32 0.0, %v2705_v52 }
  0xe6   :  { %v911_v53 = vmul.f32 0.5, %v907_v37  ;;  %v912_v56 = vmul.f32 0.5, %v908_v8  ;;  %v913_v57 = vmul.f32 0.5, %v909_v60  ;;  %v914_v22 = vmul.f32 0.5, %v910_v19 }
  0xe8   :  { %vm919_vm7 = vcmp.lt.f32.partialorder %v911_v53, %v915_v35  ;;  %vm920_vm8 = vcmp.lt.f32.partialorder %v912_v56, %v916_v47  ;;  %vm921_vm9 = vcmp.lt.f32.partialorder %v913_v57, %v917_v36  ;;  %vm922_vm10 = vcmp.lt.f32.partialorder %v914_v22, %v918_v7 }
  0xe9   :  { %v927_v24 = vsel %vm919_vm7, %v2696_v44, %v923_v32  ;;  %v928_v29 = vsel %vm920_vm8, %v2699_v54, %v924_v59  ;;  %v929_v15 = vsel %vm921_vm9, %v2702_v2, %v925_v13  ;;  %v930_v45 = vsel %vm922_vm10, %v2705_v52, %v926_v26 }
  0xea   :  { %v2748_v62 = vadd.f32 %v927_v24, %v2684_v38  ;;  %v2751_v17 = vadd.f32 %v928_v29, %v2687_v16  ;;  %v2754_v33 = vadd.f32 %v929_v15, %v2690_v12  ;;  %v2757_v36 = vadd.f32 %v930_v45, %v2693_v58 }
  0xec   :  { %v935_v44 = vsub.f32 %v1971_v39, %v2748_v62  ;;  %v936_v54 = vsub.f32 %v1973_v40, %v2751_v17  ;;  %v937_v2 = vsub.f32 %v1975_v41, %v2754_v33  ;;  %v938_v38 = vsub.f32 %v3159_v27, %v2757_v36 }
  0xed   :  { %v939_v16 = vsub.f32 %v1989_v55, %v2748_v62  ;;  %v940_v12 = vsub.f32 %v1993_v61, %v2751_v17  ;;  %v941_v58 = vsub.f32 %v3160_v9, %v2754_v33  ;;  %v942_v52 = vsub.f32 %v3161_v18, %v2757_v36 }
  0xee   :  { %1533 = vrcp.f32 %v935_v44  ;;  %v943_v7 = vsub.f32 %v3162_v6, %v2748_v62  ;;  %v944_v47 = vsub.f32 %v3163_v43, %v2751_v17  ;;  %v945_v20 = vsub.f32 %v3164_v51, %v2754_v33 }
  0xef   :  { %1535 = vrcp.f32 %v936_v54  ;;  %v946_v28 = vsub.f32 %v3165_v0, %v2757_v36  ;;  %v947_v4 = vsub.f32 %v3194_v31, %v2748_v62  ;;  %v948_v14 = vsub.f32 %v3195_v48, %v2751_v17 }
  0xf0   :  { %1537 = vrcp.f32 %v937_v2  ;;  %v949_v10 = vsub.f32 %v3196_v63, %v2754_v33  ;;  %v950_v42 = vsub.f32 %v3197_v11, %v2757_v36 }
  0xf1   :  { %1539 = vrcp.f32 %v938_v38 }
  0xf2   :  { %1541 = vrcp.f32 %v939_v16 }
  0xf3   :  { %1543 = vrcp.f32 %v940_v12 }
  0xf4   :  { %v1534_v35 = vpop.eup %1533  ;;  %1545 = vrcp.f32 %v941_v58 }
  0xf5   :  { %v1536_v1 = vpop.eup %1535  ;;  %1547 = vrcp.f32 %v942_v52  ;;  %v983_v30 = vmul.f32 %v1534_v35, %v1534_v35 }
  0xf6   :  { %v1538_v5 = vpop.eup %1537  ;;  %1549 = vrcp.f32 %v943_v7  ;;  %v984_v37 = vmul.f32 %v1536_v1, %v1536_v1 }
  0xf7   :  { %v1540_v23 = vpop.eup %1539  ;;  %1551 = vrcp.f32 %v944_v47  ;;  %v985_v19 = vmul.f32 %v1538_v5, %v1538_v5 }
  0xf8   :  { %v1542_v34 = vpop.eup %1541  ;;  %1553 = vrcp.f32 %v945_v20  ;;  %v986_v32 = vmul.f32 %v1540_v23, %v1540_v23 }
  0xf9   :  { %v1544_v50 = vpop.eup %1543  ;;  %1555 = vrcp.f32 %v946_v28  ;;  %v987_v25 = vmul.f32 %v1542_v34, %v1542_v34  ;;  %v967_v26 = vadd.f32 %v1542_v34, %v1534_v35 }
  0xfa   :  { %v1546_v49 = vpop.eup %1545  ;;  %1557 = vrcp.f32 %v947_v4  ;;  %v988_v8 = vmul.f32 %v1544_v50, %v1544_v50  ;;  %v968_v53 = vadd.f32 %v1544_v50, %v1536_v1 }
  0xfb   :  { %v1548_v46 = vpop.eup %1547  ;;  %1559 = vrcp.f32 %v948_v14  ;;  %v989_v59 = vmul.f32 %v1546_v49, %v1546_v49  ;;  %v969_v24 = vadd.f32 %v1546_v49, %v1538_v5  ;;  %v991_v15 = vadd.f32 %v987_v25, %v983_v30 }
  0xfc   :  { %v1550_v3 = vpop.eup %1549  ;;  %1561 = vrcp.f32 %v949_v10  ;;  %v990_v56 = vmul.f32 %v1548_v46, %v1548_v46  ;;  %v970_v29 = vadd.f32 %v1548_v46, %v1540_v23  ;;  %v992_v2 = vadd.f32 %v988_v8, %v984_v37 }
  0xfd   :  { %v1552_v21 = vpop.eup %1551  ;;  %1563 = vrcp.f32 %v950_v42  ;;  %v995_v57 = vmul.f32 %v1550_v3, %v1550_v3  ;;  %v993_v52 = vadd.f32 %v989_v59, %v985_v19 }
  0xfe   :  { %v1554_v60 = vpop.eup %1553  ;;  %v996_v45 = vmul.f32 %v1552_v21, %v1552_v21  ;;  %v994_v1 = vadd.f32 %v990_v56, %v986_v32 }
  0xff   :  { %v1556_v13 = vpop.eup %1555  ;;  %v997_v38 = vmul.f32 %v1554_v60, %v1554_v60 }
 0x100   :  { %v1558_v22 = vpop.eup %1557  ;;  %v998_v7 = vmul.f32 %v1556_v13, %v1556_v13 }
 0x101   :  { %v1560_v44 = vpop.eup %1559  ;;  %v971_v54 = vadd.f32 %v1558_v22, %v1550_v3  ;;  %v999_v16 = vmul.f32 %v1558_v22, %v1558_v22 }
 0x102   :  { %v1562_v12 = vpop.eup %1561  ;;  %v972_v58 = vadd.f32 %v1560_v44, %v1552_v21  ;;  %v1000_v47 = vmul.f32 %v1560_v44, %v1560_v44 }
 0x103   :  { %v1564_v20 = vpop.eup %1563  ;;  %v973_v35 = vadd.f32 %v1562_v12, %v1554_v60  ;;  %v1001_v28 = vmul.f32 %v1562_v12, %v1562_v12  ;;  %v1003_v4 = vadd.f32 %v999_v16, %v995_v57  ;;  %v975_v5 = vadd.f32 %v971_v54, %v967_v26 }
 0x104   :  { %v974_v14 = vadd.f32 %v1564_v20, %v1556_v13  ;;  %v1002_v23 = vmul.f32 %v1564_v20, %v1564_v20  ;;  %v1004_v34 = vadd.f32 %v1000_v47, %v996_v45  ;;  %v976_v10 = vadd.f32 %v972_v58, %v968_v53 }
 0x105   :  { %v1005_v50 = vadd.f32 %v1001_v28, %v997_v38  ;;  %v1007_v42 = vadd.f32 %v1003_v4, %v991_v15  ;;  %v977_v49 = vadd.f32 %v973_v35, %v969_v24  ;;  %v979_v37 = vmul.f32 0.5, %v975_v5 }
 0x106   :  { %v1006_v46 = vadd.f32 %v1002_v23, %v998_v7  ;;  %v1008_v3 = vadd.f32 %v1004_v34, %v992_v2  ;;  %v978_v30 = vadd.f32 %v974_v14, %v970_v29  ;;  %v980_v60 = vmul.f32 0.5, %v976_v10 }
 0x107   :  { %v1009_v25 = vadd.f32 %v1005_v50, %v993_v52  ;;  %v1011_v21 = vmul.f32 0.5, %v1007_v42  ;;  %v981_v59 = vmul.f32 0.5, %v977_v49  ;;  %v1508_v53 = vadd.f32 -1.0, %v979_v37 }
 0x108   :  { %v1010_v8 = vadd.f32 %v1006_v46, %v994_v1  ;;  %v1012_v19 = vmul.f32 0.5, %v1008_v3  ;;  %v982_v26 = vmul.f32 0.5, %v978_v30  ;;  %v1509_v56 = vadd.f32 -1.0, %v980_v60 }
 0x109   :  { %v1013_v32 = vmul.f32 0.5, %v1009_v25  ;;  %1565 = vrcp.f32 %v1011_v21  ;;  %v1510_v57 = vadd.f32 -1.0, %v981_v59 }
 0x10a   :  { %v1014_v13 = vmul.f32 0.5, %v1010_v8  ;;  %1567 = vrcp.f32 %v1012_v19  ;;  %v1511_v24 = vadd.f32 -1.0, %v982_v26 }
 0x10b   :  { %1569 = vrcp.f32 %v1013_v32 }
 0x10c   :  { %1571 = vrcp.f32 %v1014_v13 }
 0x10f   :  { %v1566_v22 = vpop.eup %1565 }
 0x110   :  { %v1568_v29 = vpop.eup %1567  ;;  %v1023_v15 = vmul.f32 %v1566_v22, %v1508_v53 }
 0x111   :  { %v1570_v45 = vpop.eup %1569  ;;  %v1024_v44 = vmul.f32 %v1568_v29, %v1509_v56 }
 0x112   :  { %v1572_v54 = vpop.eup %1571  ;;  %v1025_v2 = vmul.f32 %v1570_v45, %v1510_v57  ;;  %v2792_v38 = vsub.f32 %v2748_v62, %v1023_v15 }
 0x113   :  { %v1026_v16 = vmul.f32 %v1572_v54, %v1511_v24  ;;  %v2795_v12 = vsub.f32 %v2751_v17, %v1024_v44 }
 0x114   :  { %v2798_v58 = vsub.f32 %v2754_v33, %v1025_v2  ;;  %v1031_v52 = vsub.f32 %v1971_v39, %v2792_v38  ;;  %v1035_v17 = vsub.f32 %v1989_v55, %v2792_v38  ;;  %v1039_v1 = vsub.f32 %v3162_v6, %v2792_v38 }
 0x115   :  { %v2803_v7 = vsub.f32 %v2757_v36, %v1026_v16  ;;  %v1032_v47 = vsub.f32 %v1973_v40, %v2795_v12  ;;  %v1036_v33 = vsub.f32 %v1993_v61, %v2795_v12  ;;  %v1040_v28 = vsub.f32 %v3163_v43, %v2795_v12 }
 0x116   :  { %v1033_v62 = vsub.f32 %v1975_v41, %v2798_v58  ;;  %1573 = vrcp.f32 %v1031_v52  ;;  %v1037_v36 = vsub.f32 %v3160_v9, %v2798_v58  ;;  %v1041_v14 = vsub.f32 %v3164_v51, %v2798_v58 }
 0x117   :  { %v1034_v20 = vsub.f32 %v3159_v27, %v2803_v7  ;;  %1575 = vrcp.f32 %v1032_v47  ;;  %v1038_v35 = vsub.f32 %v3161_v18, %v2803_v7  ;;  %v1042_v23 = vsub.f32 %v3165_v0, %v2803_v7 }
 0x118   :  { %1577 = vrcp.f32 %v1033_v62  ;;  %v1043_v10 = vsub.f32 %v3194_v31, %v2792_v38  ;;  %v1044_v49 = vsub.f32 %v3195_v48, %v2795_v12  ;;  %v1045_v25 = vsub.f32 %v3196_v63, %v2798_v58 }
 0x119   :  { %1579 = vrcp.f32 %v1034_v20  ;;  %v1046_v8 = vsub.f32 %v3197_v11, %v2803_v7 }
 0x11a   :  { %1581 = vrcp.f32 %v1035_v17 }
 0x11b   :  { %1583 = vrcp.f32 %v1036_v33 }
 0x11c   :  { %v1574_v4 = vpop.eup %1573  ;;  %1585 = vrcp.f32 %v1037_v36 }
 0x11d   :  { %v1576_v5 = vpop.eup %1575  ;;  %1587 = vrcp.f32 %v1038_v35  ;;  %v1063_v50 = vmul.f32 %v1574_v4, %v1031_v52 }
 0x11e   :  { %v1578_v34 = vpop.eup %1577  ;;  %1589 = vrcp.f32 %v1039_v1  ;;  %v1064_v46 = vmul.f32 %v1576_v5, %v1032_v47 }
 0x11f   :  { %v1580_v42 = vpop.eup %1579  ;;  %1591 = vrcp.f32 %v1040_v28  ;;  %v1065_v3 = vmul.f32 %v1578_v34, %v1033_v62  ;;  %v1067_v32 = vsub.f32 2.0, %v1063_v50 }
 0x120   :  { %v1582_v30 = vpop.eup %1581  ;;  %1593 = vrcp.f32 %v1041_v14  ;;  %v1066_v21 = vmul.f32 %v1580_v42, %v1034_v20  ;;  %v1068_v26 = vsub.f32 2.0, %v1064_v46 }
 0x121   :  { %v1584_v37 = vpop.eup %1583  ;;  %1595 = vrcp.f32 %v1042_v23  ;;  %v1075_v19 = vmul.f32 %v1582_v30, %v1035_v17  ;;  %v1069_v53 = vsub.f32 2.0, %v1065_v3  ;;  %v1071_v2 = vmul.f32 %v1574_v4, %v1067_v32 }
 0x122   :  { %v1586_v60 = vpop.eup %1585  ;;  %1597 = vrcp.f32 %v1043_v10  ;;  %v1076_v59 = vmul.f32 %v1584_v37, %v1036_v33  ;;  %v1070_v22 = vsub.f32 2.0, %v1066_v21  ;;  %v1072_v62 = vmul.f32 %v1576_v5, %v1068_v26 }
 0x123   :  { %v1588_v13 = vpop.eup %1587  ;;  %1599 = vrcp.f32 %v1044_v49  ;;  %v1077_v56 = vmul.f32 %v1586_v60, %v1037_v36  ;;  %v1079_v29 = vsub.f32 2.0, %v1075_v19  ;;  %v1073_v20 = vmul.f32 %v1578_v34, %v1069_v53 }
 0x124   :  { %v1590_v57 = vpop.eup %1589  ;;  %1601 = vrcp.f32 %v1045_v25  ;;  %v1078_v24 = vmul.f32 %v1588_v13, %v1038_v35  ;;  %v1080_v45 = vsub.f32 2.0, %v1076_v59  ;;  %v1074_v50 = vmul.f32 %v1580_v42, %v1070_v22 }
 0x125   :  { %v1592_v15 = vpop.eup %1591  ;;  %1603 = vrcp.f32 %v1046_v8  ;;  %v1087_v44 = vmul.f32 %v1590_v57, %v1039_v1  ;;  %v1081_v16 = vsub.f32 2.0, %v1077_v56  ;;  %v1083_v46 = vmul.f32 %v1582_v30, %v1079_v29 }
 0x126   :  { %v1594_v54 = vpop.eup %1593  ;;  %v1088_v52 = vmul.f32 %v1592_v15, %v1040_v28  ;;  %v1082_v36 = vsub.f32 2.0, %v1078_v24  ;;  %v1084_v35 = vmul.f32 %v1584_v37, %v1080_v45  ;;  %v1127_v32 = vmul.f32 %v1071_v2, %v1071_v2 }
 0x127   :  { %v1596_v47 = vpop.eup %1595  ;;  %v1089_v17 = vmul.f32 %v1594_v54, %v1041_v14  ;;  %v1091_v19 = vsub.f32 2.0, %v1087_v44  ;;  %v1085_v1 = vmul.f32 %v1586_v60, %v1081_v16  ;;  %v1111_v14 = vadd.f32 %v1083_v46, %v1071_v2 }
 0x128   :  { %v1598_v33 = vpop.eup %1597  ;;  %v1090_v3 = vmul.f32 %v1596_v47, %v1042_v23  ;;  %v1092_v11 = vsub.f32 2.0, %v1088_v52  ;;  %v1086_v26 = vmul.f32 %v1588_v13, %v1082_v36  ;;  %v1112_v30 = vadd.f32 %v1084_v35, %v1072_v62 }
 0x129   :  { %v1600_v21 = vpop.eup %1599  ;;  %v1099_v63 = vmul.f32 %v1598_v33, %v1043_v10  ;;  %v1093_v48 = vsub.f32 2.0, %v1089_v17  ;;  %v1095_v23 = vmul.f32 %v1590_v57, %v1091_v19  ;;  %v1113_v24 = vadd.f32 %v1085_v1, %v1073_v20 }
 0x12a   :  { %v1602_v59 = vpop.eup %1601  ;;  %v1100_v4 = vmul.f32 %v1600_v21, %v1044_v49  ;;  %v1094_v56 = vsub.f32 2.0, %v1090_v3  ;;  %v1096_v22 = vmul.f32 %v1592_v15, %v1092_v11  ;;  %v1114_v45 = vadd.f32 %v1086_v26, %v1074_v50 }
 0x12b   :  { %v1604_v28 = vpop.eup %1603  ;;  %v1101_v5 = vmul.f32 %v1602_v59, %v1045_v25  ;;  %v1103_v34 = vsub.f32 2.0, %v1099_v63  ;;  %v1097_v29 = vmul.f32 %v1594_v54, %v1093_v48  ;;  %v1131_v60 = vmul.f32 %v1083_v46, %v1083_v46 }
 0x12c   :  { %v1102_v42 = vmul.f32 %v1604_v28, %v1046_v8  ;;  %v1104_v53 = vsub.f32 2.0, %v1100_v4  ;;  %v1098_v44 = vmul.f32 %v1596_v47, %v1094_v56  ;;  %v1128_v16 = vmul.f32 %v1072_v62, %v1072_v62 }
 0x12d   :  { %v1105_v37 = vsub.f32 2.0, %v1101_v5  ;;  %v1107_v49 = vmul.f32 %v1598_v33, %v1103_v34  ;;  %v1132_v52 = vmul.f32 %v1084_v35, %v1084_v35  ;;  %v1129_v63 = vmul.f32 %v1073_v20, %v1073_v20 }
 0x12e   :  { %v1106_v10 = vsub.f32 2.0, %v1102_v42  ;;  %v1108_v17 = vmul.f32 %v1600_v21, %v1104_v53  ;;  %v1133_v2 = vmul.f32 %v1085_v1, %v1085_v1  ;;  %v1130_v8 = vmul.f32 %v1074_v50, %v1074_v50 }
 0x12f   :  { %v1109_v25 = vmul.f32 %v1602_v59, %v1105_v37  ;;  %v1134_v36 = vmul.f32 %v1086_v26, %v1086_v26  ;;  %v1139_v3 = vmul.f32 %v1095_v23, %v1095_v23  ;;  %v1115_v57 = vadd.f32 %v1107_v49, %v1095_v23 }
 0x130   :  { %v1110_v13 = vmul.f32 %v1604_v28, %v1106_v10  ;;  %v1135_v11 = vadd.f32 %v1131_v60, %v1127_v32  ;;  %v1140_v15 = vmul.f32 %v1096_v22, %v1096_v22  ;;  %v1141_v19 = vmul.f32 %v1097_v29, %v1097_v29 }
 0x131   :  { %v1116_v48 = vadd.f32 %v1108_v17, %v1096_v22  ;;  %v1136_v54 = vadd.f32 %v1132_v52, %v1128_v16  ;;  %v1142_v4 = vmul.f32 %v1098_v44, %v1098_v44  ;;  %v1143_v46 = vmul.f32 %v1107_v49, %v1107_v49 }
 0x132   :  { %v1117_v47 = vadd.f32 %v1109_v25, %v1097_v29  ;;  %v1137_v33 = vadd.f32 %v1133_v2, %v1129_v63  ;;  %v1144_v62 = vmul.f32 %v1108_v17, %v1108_v17  ;;  %v1145_v35 = vmul.f32 %v1109_v25, %v1109_v25 }
 0x133   :  { %v1118_v21 = vadd.f32 %v1110_v13, %v1098_v44  ;;  %v1138_v59 = vadd.f32 %v1134_v36, %v1130_v8  ;;  %v1146_v20 = vmul.f32 %v1110_v13, %v1110_v13  ;;  %v1147_v1 = vadd.f32 %v1143_v46, %v1139_v3 }
 0x134   :  { %v1119_v28 = vadd.f32 %v1115_v57, %v1111_v14  ;;  %v1148_v50 = vadd.f32 %v1144_v62, %v1140_v15  ;;  %v1149_v56 = vadd.f32 %v1145_v35, %v1141_v19  ;;  %v1120_v5 = vadd.f32 %v1116_v48, %v1112_v30 }
 0x135   :  { %v1150_v34 = vadd.f32 %v1146_v20, %v1142_v4  ;;  %v1151_v32 = vadd.f32 %v1147_v1, %v1135_v11  ;;  %v1121_v26 = vadd.f32 %v1117_v47, %v1113_v24  ;;  %v1122_v23 = vadd.f32 %v1118_v21, %v1114_v45  ;;  %v3207_v20 = vld [vmem:[#allocation37_spill] sm:$0xff] }
 0x136   :  { %v1152_v42 = vadd.f32 %v1148_v50, %v1136_v54  ;;  %v1153_v53 = vadd.f32 %v1149_v56, %v1137_v33  ;;  %v1123_v29 = vmul.f32 0.5, %v1119_v28  ;;  %v1124_v49 = vmul.f32 0.5, %v1120_v5  ;;  %v3209_v56 = vld [vmem:[#allocation38_spill] sm:$0xff] }
 0x137   :  { %v1154_v22 = vadd.f32 %v1150_v34, %v1138_v59  ;;  %v1155_v37 = vmul.f32 0.5, %v1151_v32  ;;  %v1125_v16 = vmul.f32 0.5, %v1121_v26  ;;  %v1126_v14 = vmul.f32 0.5, %v1122_v23 }
 0x138   :  { %v1156_v10 = vmul.f32 0.5, %v1152_v42  ;;  %v1157_v60 = vmul.f32 0.5, %v1153_v53  ;;  %v1512_v30 = vadd.f32 -1.0, %v1123_v29  ;;  %v1513_v52 = vadd.f32 -1.0, %v1124_v49 }
 0x139   :  { %v1158_v44 = vmul.f32 0.5, %v1154_v22  ;;  %1605 = vrcp.f32 %v1155_v37  ;;  %v1514_v17 = vadd.f32 -1.0, %v1125_v16  ;;  %v1515_v25 = vadd.f32 -1.0, %v1126_v14 }
 0x13a   :  { %1607 = vrcp.f32 %v1156_v10 }
 0x13b   :  { %1609 = vrcp.f32 %v1157_v60 }
 0x13c   :  { %1611 = vrcp.f32 %v1158_v44 }
 0x13f   :  { %v1606_v24 = vpop.eup %1605 }
 0x140   :  { %v1608_v63 = vpop.eup %1607  ;;  %v1167_v45 = vmul.f32 %v1606_v24, %v1512_v30 }
 0x141   :  { %v1610_v2 = vpop.eup %1609  ;;  %v1168_v13 = vmul.f32 %v1608_v63, %v1513_v52 }
 0x142   :  { %v1612_v8 = vpop.eup %1611  ;;  %v1169_v36 = vmul.f32 %v1610_v2, %v1514_v17  ;;  %v2836_v3 = vsub.f32 %v2792_v38, %v1167_v45 }
 0x143   :  { %v1170_v57 = vmul.f32 %v1612_v8, %v1515_v25  ;;  %v2839_v11 = vsub.f32 %v2795_v12, %v1168_v13 }
 0x144   :  { %3198 = vst [vmem:[#allocation20_spill] sm:$0xff] %v2836_v3  ;;  %v2842_v15 = vsub.f32 %v2798_v58, %v1169_v36  ;;  %v2846_v19 = vsub.f32 %v1971_v39, %v2836_v3  ;;  %v2865_v58 = vsub.f32 %v1989_v55, %v2836_v3  ;;  %v2885_v55 = vsub.f32 %v3162_v6, %v2836_v3 }
 0x145   :  { %3199 = vst [vmem:[#allocation23_spill] sm:$0xff] %v2839_v11  ;;  %v2849_v48 = vsub.f32 %v2803_v7, %v1170_v57  ;;  %v2853_v54 = vsub.f32 %v1973_v40, %v2839_v11  ;;  %v2870_v7 = vsub.f32 %v1993_v61, %v2839_v11  ;;  %v2890_v61 = vsub.f32 %v3163_v43, %v2839_v11 }
 0x146   :  { %3200 = vst [vmem:[#allocation16_spill] sm:$0xff] %v2842_v15  ;;  %v2857_v38 = vsub.f32 %v1975_v41, %v2842_v15  ;;  %1613 = vrcp.f32 %v2846_v19  ;;  %v2875_v4 = vsub.f32 %v3160_v9, %v2842_v15  ;;  %v2895_v47 = vsub.f32 %v3164_v51, %v2842_v15  ;;  %v3206_v51 = vld [vmem:[#allocation36_spill] sm:$0xff] }
 0x147   :  { %3201 = vst [vmem:[#allocation18_spill] sm:$0xff] %v2849_v48  ;;  %v2861_v12 = vsub.f32 %v3159_v27, %v2849_v48  ;;  %1615 = vrcp.f32 %v2853_v54  ;;  %v2880_v46 = vsub.f32 %v3161_v18, %v2849_v48  ;;  %v2900_v6 = vsub.f32 %v3165_v0, %v2849_v48 }
 0x148   :  { %1617 = vrcp.f32 %v2857_v38  ;;  %3204 = vst [vmem:[#allocation29_spill] sm:$0xff] %v2895_v47  ;;  %v2905_v43 = vsub.f32 %v3194_v31, %v2836_v3  ;;  %v2910_v35 = vsub.f32 %v3206_v51, %v2839_v11  ;;  %v2917_v1 = vsub.f32 %v3207_v20, %v2842_v15 }
 0x149   :  { %3202 = vst [vmem:[#allocation21_spill] sm:$0xff] %v2861_v12  ;;  %1619 = vrcp.f32 %v2861_v12  ;;  %v2924_v5 = vsub.f32 %v3209_v56, %v2849_v48 }
 0x14a   :  { %3203 = vst [vmem:[#allocation24_spill] sm:$0xff] %v2880_v46  ;;  %1621 = vrcp.f32 %v2865_v58 }
 0x14b   :  { %1623 = vrcp.f32 %v2870_v7  ;;  %3205 = vst [vmem:[#allocation30_spill] sm:$0xff] %v2900_v6 }
 0x14c   :  { %v1614_v9 = vpop.eup %1613  ;;  %1625 = vrcp.f32 %v2875_v4  ;;  %3208 = vst [vmem:[#allocation31_spill] sm:$0xff] %v2917_v1 }
 0x14d   :  { %v1616_v18 = vpop.eup %1615  ;;  %1627 = vrcp.f32 %v2880_v46  ;;  %v1195_v21 = vmul.f32 %v1614_v9, %v2846_v19  ;;  %3210 = vst [vmem:[#allocation32_spill] sm:$0xff] %v2924_v5 }
 0x14e   :  { %v1618_v33 = vpop.eup %1617  ;;  %1629 = vrcp.f32 %v2885_v55  ;;  %v1196_v59 = vmul.f32 %v1616_v18, %v2853_v54 }
 0x14f   :  { %v1620_v62 = vpop.eup %1619  ;;  %1631 = vrcp.f32 %v2890_v61  ;;  %v1197_v31 = vmul.f32 %v1618_v33, %v2857_v38  ;;  %v1199_v53 = vsub.f32 2.0, %v1195_v21 }
 0x150   :  { %v1622_v0 = vpop.eup %1621  ;;  %v1198_v28 = vmul.f32 %v1620_v62, %v2861_v12  ;;  %1633 = vrcp.f32 %v2895_v47  ;;  %v1200_v23 = vsub.f32 2.0, %v1196_v59 }
 0x151   :  { %v1624_v50 = vpop.eup %1623  ;;  %v1211_v34 = vmul.f32 %v1622_v0, %v2865_v58  ;;  %1635 = vrcp.f32 %v2900_v6  ;;  %v1201_v29 = vsub.f32 2.0, %v1197_v31  ;;  %v1203_v24 = vmul.f32 %v1614_v9, %v1199_v53 }
 0x152   :  { %v1626_v32 = vpop.eup %1625  ;;  %v1212_v26 = vmul.f32 %v1624_v50, %v2870_v7  ;;  %1637 = vrcp.f32 %v2905_v43  ;;  %v1202_v10 = vsub.f32 2.0, %v1198_v28  ;;  %v1204_v25 = vmul.f32 %v1616_v18, %v1200_v23 }
 0x153   :  { %v1628_v42 = vpop.eup %1627  ;;  %v1213_v22 = vmul.f32 %v1626_v32, %v2875_v4  ;;  %1639 = vrcp.f32 %v2910_v35  ;;  %v1215_v44 = vsub.f32 2.0, %v1211_v34  ;;  %v1205_v13 = vmul.f32 %v1618_v33, %v1201_v29 }
 0x154   :  { %v1630_v37 = vpop.eup %1629  ;;  %1641 = vrcp.f32 %v2917_v1  ;;  %v1214_v49 = vmul.f32 %v1628_v42, %v2880_v46  ;;  %v1216_v30 = vsub.f32 2.0, %v1212_v26  ;;  %v2938_v8 = vmul.f32 %v1620_v62, %v1202_v10 }
 0x155   :  { %v1632_v60 = vpop.eup %1631  ;;  %v1227_v16 = vmul.f32 %v1630_v37, %v2885_v55  ;;  %1643 = vrcp.f32 %v2924_v5  ;;  %v1217_v63 = vsub.f32 2.0, %v1213_v22  ;;  %v1219_v59 = vmul.f32 %v1622_v0, %v1215_v44 }
 0x156   :  { %v1634_v14 = vpop.eup %1633  ;;  %v1228_v52 = vmul.f32 %v1632_v60, %v2890_v61  ;;  %v1218_v21 = vsub.f32 2.0, %v1214_v49  ;;  %v1220_v56 = vmul.f32 %v1624_v50, %v1216_v30  ;;  %v2944_v23 = vmul.f32 %v1203_v24, %v1203_v24 }
 0x157   :  { %v1636_v17 = vpop.eup %1635  ;;  %v1229_v45 = vmul.f32 %v1634_v14, %v2895_v47  ;;  %v1231_v57 = vsub.f32 2.0, %v1227_v16  ;;  %v1221_v53 = vmul.f32 %v1626_v32, %v1217_v63  ;;  %v2947_v10 = vmul.f32 %v1204_v25, %v1204_v25 }
 0x158   :  { %v1638_v2 = vpop.eup %1637  ;;  %v1230_v36 = vmul.f32 %v1636_v17, %v2900_v6  ;;  %v1232_v20 = vsub.f32 2.0, %v1228_v52  ;;  %v1222_v49 = vmul.f32 %v1628_v42, %v1218_v21  ;;  %v1257_v63 = vmul.f32 %v1205_v13, %v1205_v13 }
 0x159   :  { %v1640_v51 = vpop.eup %1639  ;;  %v1243_v31 = vmul.f32 %v1638_v2, %v2905_v43  ;;  %v1233_v9 = vsub.f32 2.0, %v1229_v45  ;;  %v1235_v22 = vmul.f32 %v1630_v37, %v1231_v57  ;;  %v1259_v27 = vmul.f32 %v1219_v59, %v1219_v59 }
 0x15a   :  { %v1642_v28 = vpop.eup %1641  ;;  %v1234_v18 = vsub.f32 2.0, %v1230_v36  ;;  %v1244_v34 = vmul.f32 %v1640_v51, %v2910_v35  ;;  %v1236_v44 = vmul.f32 %v1632_v60, %v1232_v20  ;;  %v1260_v57 = vmul.f32 %v1220_v56, %v1220_v56 }
 0x15b   :  { %v1644_v26 = vpop.eup %1643  ;;  %v1245_v33 = vmul.f32 %v1642_v28, %v2917_v1  ;;  %v1247_v62 = vsub.f32 2.0, %v1243_v31  ;;  %v1237_v30 = vmul.f32 %v1634_v14, %v1233_v9  ;;  %v1258_v31 = vmul.f32 %v2938_v8, %v2938_v8 }
 0x15c   :  { %v1246_v29 = vmul.f32 %v1644_v26, %v2924_v5  ;;  %v1248_v0 = vsub.f32 2.0, %v1244_v34  ;;  %v1238_v52 = vmul.f32 %v1636_v17, %v1234_v18  ;;  %v2951_v41 = vmul.f32 %v1235_v22, %v1235_v22 }
 0x15d   :  { %v1249_v50 = vsub.f32 2.0, %v1245_v33  ;;  %v1251_v16 = vmul.f32 %v1638_v2, %v1247_v62  ;;  %v1261_v42 = vmul.f32 %v1221_v53, %v1221_v53  ;;  %v1262_v60 = vmul.f32 %v1222_v49, %v1222_v49 }
 0x15e   :  { %v1250_v45 = vsub.f32 2.0, %v1246_v29  ;;  %v1252_v36 = vmul.f32 %v1640_v51, %v1248_v0  ;;  %v2955_v21 = vmul.f32 %v1236_v44, %v1236_v44  ;;  %v2959_v17 = vmul.f32 %v1237_v30, %v1237_v30 }
 0x15f   :  { %v1253_v32 = vmul.f32 %v1642_v28, %v1249_v50  ;;  %v2953_v34 = vmul.f32 %v1251_v16, %v1251_v16  ;;  %v2961_v2 = vmul.f32 %v1238_v52, %v1238_v52  ;;  %v1271_v28 = vadd.f32 %v1259_v27, %v2944_v23 }
 0x160   :  { %v1254_v37 = vmul.f32 %v1644_v26, %v1250_v45  ;;  %v2957_v14 = vmul.f32 %v1252_v36, %v1252_v36  ;;  %v1272_v18 = vadd.f32 %v1260_v57, %v2947_v10  ;;  %v1273_v33 = vadd.f32 %v1261_v42, %v1257_v63 }
 0x161   :  { %v2963_v51 = vmul.f32 %v1253_v32, %v1253_v32  ;;  %v1275_v9 = vadd.f32 %v2953_v34, %v2951_v41  ;;  %v1274_v62 = vadd.f32 %v1262_v60, %v1258_v31  ;;  %v1287_v45 = vmul.f32 %v2944_v23, %v1203_v24 }
 0x162   :  { %v2965_v20 = vmul.f32 %v1254_v37, %v1254_v37  ;;  %v1276_v26 = vadd.f32 %v2957_v14, %v2955_v21  ;;  %v1288_v39 = vmul.f32 %v2947_v10, %v1204_v25  ;;  %v1289_v48 = vmul.f32 %v1257_v63, %v1205_v13 }
 0x163   :  { %v1277_v29 = vadd.f32 %v2963_v51, %v2959_v17  ;;  %v1279_v50 = vadd.f32 %v1275_v9, %v1271_v28  ;;  %v1291_v15 = vmul.f32 %v1259_v27, %v1219_v59  ;;  %v1292_v5 = vmul.f32 %v1260_v57, %v1220_v56 }
 0x164   :  { %v1278_v0 = vadd.f32 %v2965_v20, %v2961_v2  ;;  %v1280_v40 = vadd.f32 %v1276_v26, %v1272_v18  ;;  %v1293_v6 = vmul.f32 %v1261_v42, %v1221_v53  ;;  %v1290_v46 = vmul.f32 %v1258_v31, %v2938_v8 }
 0x165   :  { %v1281_v11 = vadd.f32 %v1277_v29, %v1273_v33  ;;  %v1299_v12 = vmul.f32 %v2951_v41, %v1235_v22  ;;  %v1303_v1 = vmul.f32 %v2953_v34, %v1251_v16  ;;  %v2982_v47 = vmul.f32 0.5, %v1279_v50 }
 0x166   :  { %v1282_v3 = vadd.f32 %v1278_v0, %v1274_v62  ;;  %v1294_v28 = vmul.f32 %v1262_v60, %v1222_v49  ;;  %v1300_v24 = vmul.f32 %v2955_v21, %v1236_v44  ;;  %v1304_v9 = vmul.f32 %v2957_v14, %v1252_v36 }
 0x167   :  { %v2986_v25 = vmul.f32 0.5, %v1280_v40  ;;  %v1295_v13 = vadd.f32 %v1291_v15, %v1287_v45  ;;  %v1301_v59 = vmul.f32 %v2959_v17, %v1237_v30  ;;  %v1305_v56 = vmul.f32 %v2963_v51, %v1253_v32 }
 0x168   :  { %v2990_v53 = vmul.f32 0.5, %v1281_v11  ;;  %v2992_v8 = vmul.f32 0.5, %v1282_v3  ;;  %v1296_v22 = vadd.f32 %v1292_v5, %v1288_v39  ;;  %v1297_v16 = vadd.f32 %v1293_v6, %v1289_v48 }
 0x169   :  { %v1302_v18 = vmul.f32 %v2961_v2, %v1238_v52  ;;  %v1306_v49 = vmul.f32 %v2965_v20, %v1254_v37  ;;  %v1307_v44 = vadd.f32 %v1303_v1, %v1299_v12  ;;  %v1315_v40 = vmul.f32 %v2944_v23, %v2944_v23 }
 0x16a   :  { %v1308_v36 = vadd.f32 %v1304_v9, %v1300_v24  ;;  %v1316_v15 = vmul.f32 %v2947_v10, %v2947_v10  ;;  %v1317_v30 = vmul.f32 %v1257_v63, %v1257_v63  ;;  %1645 = vrcp.f32 %v2982_v47 }
 0x16b   :  { %v1309_v11 = vadd.f32 %v1305_v56, %v1301_v59  ;;  %v1319_v3 = vmul.f32 %v1259_v27, %v1259_v27  ;;  %v1320_v32 = vmul.f32 %v1260_v57, %v1260_v57  ;;  %1647 = vrcp.f32 %v2986_v25 }
 0x16c   :  { %v1318_v39 = vmul.f32 %v1258_v31, %v1258_v31  ;;  %v1321_v48 = vmul.f32 %v1261_v42, %v1261_v42  ;;  %v1322_v6 = vmul.f32 %v1262_v60, %v1262_v60  ;;  %1649 = vrcp.f32 %v2990_v53 }
 0x16d   :  { %v1298_v12 = vadd.f32 %v1294_v28, %v1290_v46  ;;  %1651 = vrcp.f32 %v2992_v8  ;;  %v1310_v1 = vadd.f32 %v1306_v49, %v1302_v18  ;;  %v1311_v5 = vadd.f32 %v1307_v44, %v1295_v13  ;;  %v3211_v13 = vld [vmem:[#allocation29_spill] sm:$0xff]  ;;  %v3216_v18 = vld [vmem:[#allocation32_spill] sm:$0xff] }
 0x16e   :  { %v1327_v23 = vmul.f32 %v2951_v41, %v2951_v41  ;;  %v1331_v10 = vmul.f32 %v2953_v34, %v2953_v34  ;;  %v1312_v27 = vadd.f32 %v1308_v36, %v1296_v22  ;;  %v3008_v52 = vadd.f32 %v1309_v11, %v1297_v16  ;;  %v3213_v22 = vld [vmem:[#allocation21_spill] sm:$0xff]  ;;  %v3214_v16 = vld [vmem:[#allocation24_spill] sm:$0xff] }
 0x16f   :  { %v1323_v63 = vadd.f32 %v1319_v3, %v1315_v40  ;;  %v1324_v31 = vadd.f32 %v1320_v32, %v1316_v15  ;;  %v1325_v57 = vadd.f32 %v1321_v48, %v1317_v30  ;;  %v1326_v42 = vadd.f32 %v1322_v6, %v1318_v39 }
 0x170   :  { %v1646_v37 = vpop.eup %1645  ;;  %v1328_v46 = vmul.f32 %v2955_v21, %v2955_v21  ;;  %v1329_v60 = vmul.f32 %v2959_v17, %v2959_v17  ;;  %v1330_v41 = vmul.f32 %v2961_v2, %v2961_v2  ;;  %v1332_v34 = vmul.f32 %v2957_v14, %v2957_v14 }
 0x171   :  { %v1648_v26 = vpop.eup %1647  ;;  %v1333_v33 = vmul.f32 %v2963_v51, %v2963_v51  ;;  %v1351_v62 = vmul.f32 %v1646_v37, %v2982_v47  ;;  %v1334_v0 = vmul.f32 %v2965_v20, %v2965_v20  ;;  %v1335_v21 = vadd.f32 %v1331_v10, %v1327_v23 }
 0x172   :  { %v1650_v29 = vpop.eup %1649  ;;  %v1352_v50 = vmul.f32 %v1648_v26, %v2986_v25  ;;  %v1395_v17 = vmul.f32 %v2865_v58, %v2846_v19  ;;  %v1396_v14 = vmul.f32 %v2870_v7, %v2853_v54  ;;  %v1397_v51 = vmul.f32 %v2875_v4, %v2857_v38  ;;  %v3212_v19 = vld [vmem:[#allocation31_spill] sm:$0xff]  ;;  %v3215_v7 = vld [vmem:[#allocation30_spill] sm:$0xff] }
 0x173   :  { %v1652_v45 = vpop.eup %1651  ;;  %v1353_v2 = vmul.f32 %v1650_v29, %v2990_v53  ;;  %v1399_v28 = vmul.f32 %v2905_v43, %v2885_v55  ;;  %v1355_v24 = vsub.f32 2.0, %v1351_v62  ;;  %v1400_v9 = vmul.f32 %v2910_v35, %v2890_v61 }
 0x174   :  { %v1354_v20 = vmul.f32 %v1652_v45, %v2992_v8  ;;  %v1401_v58 = vmul.f32 %v3212_v19, %v3211_v13  ;;  %v1336_v59 = vadd.f32 %v1332_v34, %v1328_v46  ;;  %v1356_v56 = vsub.f32 2.0, %v1352_v50 }
 0x175   :  { %v1398_v54 = vmul.f32 %v3214_v16, %v3213_v22  ;;  %v1402_v38 = vmul.f32 %v3216_v18, %v3215_v7  ;;  %v1337_v4 = vadd.f32 %v1333_v33, %v1329_v60  ;;  %v1338_v49 = vadd.f32 %v1334_v0, %v1330_v41 }
 0x176   :  { %v1357_v55 = vsub.f32 2.0, %v1353_v2  ;;  %v1403_v43 = vmul.f32 %v1399_v28, %v1395_v17  ;;  %v1339_v44 = vadd.f32 %v1335_v21, %v1323_v63  ;;  %v1358_v40 = vsub.f32 2.0, %v1354_v20 }
 0x177   :  { %v1404_v36 = vmul.f32 %v1400_v9, %v1396_v14  ;;  %v1407_v61 = vmul.f32 6.2831855, %v2982_v47  ;;  %v1359_v35 = vmul.f32 %v1646_v37, %v1355_v24  ;;  %v1405_v15 = vmul.f32 %v1401_v58, %v1397_v51 }
 0x178   :  { %v1408_v30 = vmul.f32 6.2831855, %v2986_v25  ;;  %v1409_v11 = vmul.f32 6.2831855, %v2990_v53  ;;  %v1340_v3 = vadd.f32 %v1336_v59, %v1324_v31  ;;  %v1360_v32 = vmul.f32 %v1648_v26, %v1356_v56 }
 0x179   :  { %v1406_v39 = vmul.f32 %v1402_v38, %v1398_v54  ;;  %v1410_v48 = vmul.f32 6.2831855, %v2992_v8  ;;  %v1314_v6 = vadd.f32 %v1310_v1, %v1298_v12  ;;  %v1341_v23 = vadd.f32 %v1337_v4, %v1325_v57 }
 0x17a   :  { %v1361_v10 = vmul.f32 %v1650_v29, %v1357_v55  ;;  %v1411_v46 = vmul.f32 %v1407_v61, %v1403_v43  ;;  %v1342_v63 = vadd.f32 %v1338_v49, %v1326_v42  ;;  %v1362_v60 = vmul.f32 %v1652_v45, %v1358_v40 }
 0x17b   :  { %v1375_v41 = vmul.f32 %v1311_v5, %v1311_v5  ;;  %v1412_v34 = vmul.f32 %v1408_v30, %v1404_v36  ;;  %v1343_v47 = vmul.f32 3.0, %v1339_v44  ;;  %v1363_v37 = vmul.f32 %v1359_v35, %v1359_v35 }
 0x17c   :  { %v1376_v33 = vmul.f32 %v1312_v27, %v1312_v27  ;;  %v1413_v62 = vmul.f32 %v1409_v11, %v1405_v15  ;;  %v1344_v25 = vmul.f32 3.0, %v1340_v3  ;;  %v1364_v0 = vmul.f32 %v1360_v32, %v1360_v32  ;;  %v3217_v11 = vld [vmem:[#allocation20_spill] sm:$0xff] }
 0x17d   :  { %v1414_v53 = vmul.f32 %v1410_v48, %v1406_v39  ;;  %1653 = vlog2.f32 %v1411_v46  ;;  %v1345_v31 = vmul.f32 3.0, %v1341_v23  ;;  %v1365_v26 = vmul.f32 %v1361_v10, %v1361_v10  ;;  %v3218_v48 = vld [vmem:[#allocation23_spill] sm:$0xff]  ;;  %v3219_v23 = vld [vmem:[#allocation16_spill] sm:$0xff] }
 0x17e   :  { %v1377_v8 = vmul.f32 %v3008_v52, %v3008_v52  ;;  %1655 = vlog2.f32 %v1412_v34  ;;  %v1346_v12 = vmul.f32 3.0, %v1342_v63  ;;  %v1366_v1 = vmul.f32 %v1362_v60, %v1362_v60  ;;  %v3220_v63 = vld [vmem:[#allocation18_spill] sm:$0xff] }
 0x17f   :  { %v1378_v57 = vmul.f32 %v1314_v6, %v1314_v6  ;;  %1657 = vlog2.f32 %v1413_v62  ;;  %v1367_v5 = vmul.f32 0.125, %v1343_v47  ;;  %v1379_v42 = vmul.f32 0.20833333, %v1375_v41  ;;  %v3221_v47 = vld [vmem:[#allocation25_spill] sm:$0xff]  ;;  %v3222_v62 = vld [vmem:[#allocation26_spill] sm:$0xff] }
 0x180   :  { %v1383_v29 = vmul.f32 %v1363_v37, %v1359_v35  ;;  %1659 = vlog2.f32 %v1414_v53  ;;  %v1368_v27 = vmul.f32 0.125, %v1344_v25  ;;  %v1380_v21 = vmul.f32 0.20833333, %v1376_v33  ;;  %v3223_v53 = vld [vmem:[#allocation27_spill] sm:$0xff] }
 0x181   :  { %v1384_v50 = vmul.f32 %v1364_v0, %v1360_v32  ;;  %v1369_v17 = vmul.f32 0.125, %v1345_v31  ;;  %v1381_v45 = vmul.f32 0.20833333, %v1377_v8  ;;  %v1385_v2 = vmul.f32 %v1365_v26, %v1361_v10 }
 0x182   :  { %v1370_v51 = vmul.f32 0.125, %v1346_v12  ;;  %v1382_v28 = vmul.f32 0.20833333, %v1378_v57  ;;  %v1386_v20 = vmul.f32 %v1366_v1, %v1362_v60  ;;  %v1371_v24 = vmul.f32 %v1367_v5, %v1363_v37  ;;  %v1448_v12 = vld [vmem:[#allocation8 + $0x8] sm:$0xff]  ;;  %v3226_v5 = vld [vmem:[#allocation22_spill] sm:$0xff] }
 0x183   :  { %v1654_v14 = vpop.eup %1653  ;;  %v1387_v9 = vmul.f32 %v1383_v29, %v1379_v42  ;;  %v1372_v58 = vmul.f32 %v1368_v27, %v1364_v0  ;;  %v1388_v59 = vmul.f32 %v1384_v50, %v1380_v21  ;;  %v1373_v16 = vmul.f32 %v1369_v17, %v1365_v26  ;;  %v1447_v0 = vld [vmem:[#allocation8] sm:$0xff]  ;;  %v3224_v26 = vld [vmem:[#allocation19_spill] sm:$0xff]  ;;  %v1449_v29 = vld [vmem:[#allocation8 + $0x10] sm:$0xff] }
 0x184   :  { %v1656_v52 = vpop.eup %1655  ;;  %v1416_v13 = vmul.f32 0.6931472, %v1654_v14  ;;  %v1389_v54 = vmul.f32 %v1385_v2, %v1381_v45  ;;  %v1374_v38 = vmul.f32 %v1370_v51, %v1366_v1  ;;  %v1390_v4 = vmul.f32 %v1386_v20, %v1382_v28  ;;  %v3225_v1 = vld [vmem:[#allocation28_spill] sm:$0xff]  ;;  %v3227_v27 = vld [vmem:[#allocation15_spill] sm:$0xff]  ;;  %v1450_v50 = vld [vmem:[#allocation8 + $0x18] sm:$0xff] }
 0x185   :  { %v1658_v19 = vpop.eup %1657  ;;  %v1418_v56 = vmul.f32 0.6931472, %v1656_v52  ;;  %v1391_v43 = vsub.f32 %v1371_v24, %v1387_v9  ;;  %v1392_v36 = vsub.f32 %v1372_v58, %v1388_v59  ;;  %v3228_v45 = vld [vmem:[#allocation17_spill] sm:$0xff] }
 0x186   :  { %v1660_v22 = vpop.eup %1659  ;;  %v1420_v7 = vmul.f32 0.6931472, %v1658_v19  ;;  %v1423_v18 = vmul.f32 0.5, %v1416_v13  ;;  %v1393_v15 = vsub.f32 %v1373_v16, %v1389_v54  ;;  %v1394_v32 = vsub.f32 %v1374_v38, %v1390_v4 }
 0x187   :  { %v1422_v49 = vmul.f32 0.6931472, %v1660_v22  ;;  %v1424_v55 = vmul.f32 0.5, %v1418_v56 }
 0x188   :  { %v1425_v44 = vmul.f32 0.5, %v1420_v7  ;;  %v1427_v40 = vsub.f32 2.982607, %v1423_v18 }
 0x189   :  { %v1426_v61 = vmul.f32 0.5, %v1422_v49  ;;  %v1428_v35 = vsub.f32 2.982607, %v1424_v55 }
 0x18a   :  { %v1429_v30 = vsub.f32 2.982607, %v1425_v44  ;;  %v1431_v3 = vsub.f32 %v1427_v40, %v3217_v11 }
 0x18b   :  { %v1430_v39 = vsub.f32 2.982607, %v1426_v61  ;;  %v1432_v6 = vsub.f32 %v1428_v35, %v3218_v48 }
 0x18c   :  { %v1433_v10 = vsub.f32 %v1429_v30, %v3219_v23  ;;  %v1435_v46 = vadd.f32 %v1431_v3, %v1391_v43 }
 0x18d   :  { %v1434_v60 = vsub.f32 %v1430_v39, %v3220_v63  ;;  %v1436_v41 = vadd.f32 %v1432_v6, %v1392_v36 }
 0x18e   :  { %v1437_v34 = vadd.f32 %v1433_v10, %v1393_v15  ;;  %v1439_v37 = vadd.f32 %v1435_v46, %v3221_v47 }
 0x18f   :  { %v1438_v33 = vadd.f32 %v1434_v60, %v1394_v32  ;;  %v1440_v25 = vadd.f32 %v1436_v41, %v3222_v62 }
 0x190   :  { %v1441_v31 = vadd.f32 %v1437_v34, %v3223_v53  ;;  %v1443_v8 = vsub.f32 %v3224_v26, %v1439_v37 }
 0x191   :  { %v1442_v57 = vadd.f32 %v1438_v33, %v3225_v1  ;;  %v1444_v42 = vsub.f32 %v3226_v5, %v1440_v25 }
 0x192   :  { %v1445_v21 = vsub.f32 %v3227_v27, %v1441_v31  ;;  %v1451_v17 = vadd.f32 %v1447_v0, %v1443_v8 }
 0x193   :  { %v1446_v2 = vsub.f32 %v3228_v45, %v1442_v57  ;;  %v1452_v14 = vadd.f32 %v1448_v12, %v1444_v42 }
 0x194   :  { %v1453_v51 = vadd.f32 %v1449_v29, %v1445_v21 }
 0x195   :  { %v1454_v28 = vadd.f32 %v1450_v50, %v1446_v2  ;;  %v1455_v20 = vmax.f32 %v1451_v17, %v1452_v14 }
 0x197   :  { %v1456_v52 = vmax.f32 %v1453_v51, %v1454_v28 }
 0x199   :  { %v1457_v24 = vmax.f32 %v1455_v20, %v1456_v52 }
 0x19b   :  { %v1458_v9 = vsub.f32 %v1451_v17, %v1457_v24  ;;  %v1459_v13 = vsub.f32 %v1452_v14, %v1457_v24  ;;  %v1460_v19 = vsub.f32 %v1453_v51, %v1457_v24  ;;  %v1461_v58 = vsub.f32 %v1454_v28, %v1457_v24 }
 0x19d   :  { %v1462_v59 = vmul.f32 1.442695, %v1458_v9  ;;  %v1464_v56 = vmul.f32 1.442695, %v1459_v13  ;;  %v1466_v22 = vmul.f32 1.442695, %v1460_v19 }
 0x19e   :  { %v1468_v16 = vmul.f32 1.442695, %v1461_v58 }
 0x19f   :  { %1661 = vpow2.f32 %v1462_v59 }
 0x1a0   :  { %1663 = vpow2.f32 %v1464_v56 }
 0x1a1   :  { %1665 = vpow2.f32 %v1466_v22 }
 0x1a2   :  { %1667 = vpow2.f32 %v1468_v16 }
 0x1a5   :  { %v1662_v54 = vpop.eup %1661 }
 0x1a6   :  { %v1664_v7 = vpop.eup %1663 }
 0x1a7   :  { %v1666_v18 = vpop.eup %1665  ;;  %v1470_v38 = vadd.f32 %v1664_v7, %v1662_v54 }
 0x1a8   :  { %v1668_v4 = vpop.eup %1667 }
 0x1a9   :  { %v1471_v49 = vadd.f32 %v1666_v18, %v1470_v38 }
 0x1ab   :  { %v1472_v55 = vadd.f32 %v1668_v4, %v1471_v49 }
 0x1ad   :  { %1669 = vlog2.f32 %v1472_v55 }
 0x1b3   :  { %v1670_v43 = vpop.eup %1669 }
 0x1b4   :  { %v1474_v44 = vmul.f32 0.6931472, %v1670_v43 }
 0x1b6   :  { %v1475_v40 = vadd.f32 %v1474_v44, %v1457_v24 }
 0x1b8   :  { %1476 = vst [vmem:[#allocation10] sm:$0xff] %v1475_v40 }
 0x1b9   :  { %1487 = dma.vmem_to_hbm [thread:$0]  %s1483_s3, 128, %s1485_s11, [#allocation4]  }
 0x1ba   :  { %1797 = dma.done.wait [#allocation4], 128  }
 0x1bb   :  { %1798 = vsyncadd [#allocation4], 4294967168 }
 0x1bc   :  { %1492 = vsyncpa [#allocation3], 1 }
 0x1bd   :  { %1493 = vsyncpa [#allocation6], 1 }
 0x1be   :  { %1494 = vsyncpa [#allocation9], 1 }
 0x1bf   :  { %1495 = vsyncpa [#allocation4], 1 }

</bundles_post_ra>
